<compile_context>
chip_gen: v6e
topology: v6e:2x2x1
jax: 0.10.0
libtpu: 0.0.40
codegen_flags: <defaults>
</compile_context>

<pallas_src>
import jax
import jax.numpy as jnp
from jax import lax
from jax.experimental import pallas as pl
from jax.experimental.pallas import tpu as pltpu


def _softplus(x):
    # stable softplus: log(1 + exp(x)) == max(x, 0) + log(1 + exp(-|x|))
    return jnp.maximum(x, 0.0) + jnp.log(1.0 + jnp.exp(-jnp.abs(x)))


def _gauss_jordan_solve(G, t):
    """Solve G @ B = t for a small SPD G ([n, n]), t ([n, 1]); fully unrolled."""
    n = G.shape[0]
    A = G
    b = t
    row_ids_a = lax.broadcasted_iota(jnp.int32, (n, n), 0)
    row_ids_b = lax.broadcasted_iota(jnp.int32, (n, 1), 0)
    for k in range(n):                      # static unroll (n == D+1 == 9)
        piv = A[k:k + 1, k:k + 1]           # [1, 1]
        norm_a = A[k:k + 1, :] / piv        # [1, n]   normalized pivot row
        norm_b = b[k:k + 1, :] / piv        # [1, 1]
        col_k = A[:, k:k + 1]               # [n, 1]
        A = jnp.where(row_ids_a == k, norm_a, A - col_k * norm_a)
        b = jnp.where(row_ids_b == k, norm_b, b - col_k * norm_b)
    return b                                # [n, 1]


def _regularizer_kernel(x_ref, w_ref, loss_ref):
    bsz, num_samples, _ = x_ref.shape
    w = w_ref[...]                                                    # [D+1, 1]
    total = jnp.float32(0.0)
    for b in range(bsz):                    # static unroll over the tiny batch
        X = x_ref[b]                                                  # [S, D+1]
        # model(x_local[:, :-1]) with the bias folded into the ones column.
        y = jax.nn.sigmoid(
            jnp.dot(X, w, preferred_element_type=jnp.float32))        # [S, 1]
        # Gram matrix X^T X and X^T y (contract over the sample axis S).
        G = lax.dot_general(X, X, (((0,), (0,)), ((), ())),
                            preferred_element_type=jnp.float32)       # [D+1, D+1]
        t = lax.dot_general(X, y, (((0,), (0,)), ((), ())),
                            preferred_element_type=jnp.float32)       # [D+1, 1]
        # B = inv(X^T X) @ X^T @ y, done as an in-kernel solve (same math as
        # PyTorch's P = inv(X^T X) @ X^T ; B = P @ y, but better conditioned).
        Bc = _gauss_jordan_solve(G, t)                                 # [D+1, 1]
        y_lin = jnp.dot(X, Bc, preferred_element_type=jnp.float32)     # [S, 1]
        # BCE(sigmoid(y_lin), y) with torch.nn.BCELoss's -100 clamp:
        #   log(p)   = -softplus(-y_lin),  log(1-p) = -softplus(y_lin)
        log_p = jnp.maximum(-_softplus(-y_lin), -100.0)
        log_q = jnp.maximum(-_softplus(y_lin), -100.0)
        bce = -(y * log_p + (1.0 - y) * log_q)
        total = total + jnp.sum(bce)
    # mean over samples per example, then mean over batch == sum / (B * S).
    loss_ref[...] = jnp.reshape(total / (bsz * num_samples), (1, 1))


def pallas_regularizer(x_local, w_aug):
    """x_local: [B, S, D+1] float32, w_aug: [D+1, 1] float32 -> scalar loss."""
    B, S, Dp1 = x_local.shape
    out = pl.pallas_call(
        _regularizer_kernel,
        grid=(1,),
        in_specs=[
            pl.BlockSpec((B, S, Dp1), lambda i: (0, 0, 0)),
            pl.BlockSpec((Dp1, 1), lambda i: (0, 0)),
        ],
        out_specs=pl.BlockSpec((1, 1), lambda i: (0, 0)),
        out_shape=jax.ShapeDtypeStruct((1, 1), jnp.float32),
        compiler_params=pltpu.CompilerParams(
            dimension_semantics=("arbitrary",)),
    )(x_local, w_aug)
    return out[0, 0]


def reference(x_local, w_aug):
    """Pure-JAX replica of the PyTorch forward (same neighborhood / model)."""
    def per_example(X):
        y = jax.nn.sigmoid(X @ w_aug)
        P = jnp.linalg.inv(X.T @ X) @ X.T
        Bc = P @ y
        p = jax.nn.sigmoid(X @ Bc)
        bce = -(y * jnp.maximum(jnp.log(p), -100.0)
                + (1.0 - y) * jnp.maximum(jnp.log(1.0 - p), -100.0))
        return jnp.mean(bce)
    return jnp.mean(jax.vmap(per_example)(x_local))


if __name__ == "__main__":
    key = jax.random.PRNGKey(0)
    k_x, k_w, k_b, k_noise = jax.random.split(key, 4)

    B, D, S = 2, 8, 64          # batch, n_input, num_samples
    stddev = 0.1

    # deterministic inputs and synthetic model parameters
    x = jax.random.normal(k_x, (B, D), dtype=jnp.float32)
    w_model = jax.random.normal(k_w, (D, 1), dtype=jnp.float32) * 0.5
    b_model = jax.random.normal(k_b, (1,), dtype=jnp.float32) * 0.1
    w_aug = jnp.concatenate([w_model, b_model.reshape(1, 1)], axis=0)  # [D+1, 1]

    # neighborhood(x): x repeated S times + N(0, stddev) noise, + constant-1 col
    noise = jax.random.normal(k_noise, (B, S, D), dtype=jnp.float32) * stddev
    x_local = jnp.concatenate(
        [x[:, None, :] + noise, jnp.ones((B, S, 1), jnp.float32)], axis=-1)

    out = pallas_regularizer(x_local, w_aug)
    out = jax.block_until_ready(out)

    ref = reference(x_local, w_aug)
    assert bool(jnp.isfinite(out)), out
    assert jnp.allclose(out, ref, rtol=2e-2, atol=2e-3), (out, ref)
    print("KERNEL_OK")
</pallas_src>

<mosaic_0001>
module attributes {stable_mosaic.version = 11 : i64} {
  func.func @_regularizer_kernel(%arg0: i32, %arg1: memref<2x64x9xf32, #tpu.memory_space<vmem>>, %arg2: memref<9x1xf32, #tpu.memory_space<vmem>>, %arg3: memref<1x1xf32, #tpu.memory_space<vmem>>) attributes {dimension_semantics = [#tpu.dimension_semantics<arbitrary>], iteration_bounds = array<i64: 1>, scalar_prefetch = 0 : i64, scratch_operands = 0 : i64, tpu.core_type = #tpu.core_type<tc>, window_params = [{pipeline_mode = #tpu.pipeline_mode<synchronous>, transform_indices = @transform_0, window_bounds = array<i64: 2, 64, 9>}, {pipeline_mode = #tpu.pipeline_mode<synchronous>, transform_indices = @transform_1, window_bounds = array<i64: 9, 1>}, {pipeline_mode = #tpu.pipeline_mode<synchronous>, transform_indices = @transform_2, window_bounds = array<i64: 1, 1>}]} {
    %c0 = arith.constant 0 : index
    %c0_0 = arith.constant 0 : index
    %0 = vector.load %arg2[%c0, %c0_0] : memref<9x1xf32, #tpu.memory_space<vmem>>, vector<9x1xf32>
    %c0_1 = arith.constant 0 : index
    %c0_2 = arith.constant 0 : index
    %c0_3 = arith.constant 0 : index
    %1 = vector.load %arg1[%c0_1, %c0_2, %c0_3] : memref<2x64x9xf32, #tpu.memory_space<vmem>>, vector<1x64x9xf32>
    %2 = vector.shape_cast %1 : vector<1x64x9xf32> to vector<64x9xf32>
    %cst = arith.constant dense<0.000000e+00> : vector<64x1xf32>
    %3 = tpu.matmul %2, %0, %cst {dimension_numbers = #tpu.dot_dimension_numbers<[1], [0], [0], [1], [0, 0, 1, 1], [], []>} : vector<64x9xf32>, vector<9x1xf32>, vector<64x1xf32> -> vector<64x1xf32>
    %4 = arith.negf %3 : vector<64x1xf32>
    %5 = math.exp %4 : vector<64x1xf32>
    %cst_4 = arith.constant 1.000000e+00 : f32
    %6 = vector.broadcast %cst_4 : f32 to vector<64x1xf32>
    %7 = arith.addf %6, %5 : vector<64x1xf32>
    %8 = arith.divf %6, %7 : vector<64x1xf32>
    %cst_5 = arith.constant dense<0.000000e+00> : vector<9x9xf32>
    %9 = tpu.matmul %2, %2, %cst_5 {dimension_numbers = #tpu.dot_dimension_numbers<[0], [0], [1], [1], [0, 1, 1, 1], [], []>} : vector<64x9xf32>, vector<64x9xf32>, vector<9x9xf32> -> vector<9x9xf32>
    %cst_6 = arith.constant dense<0.000000e+00> : vector<9x1xf32>
    %10 = tpu.matmul %2, %8, %cst_6 {dimension_numbers = #tpu.dot_dimension_numbers<[0], [0], [1], [1], [0, 1, 1, 1], [], []>} : vector<64x9xf32>, vector<64x1xf32>, vector<9x1xf32> -> vector<9x1xf32>
    %11 = tpu.iota {dimensions = array<i32: 0>} : vector<9x9xi32>
    %12 = tpu.iota {dimensions = array<i32: 0>} : vector<9x1xi32>
    %13 = vector.extract_strided_slice %9 {offsets = [0, 0], sizes = [1, 1], strides = [1, 1]} : vector<9x9xf32> to vector<1x1xf32>
    %14 = vector.extract_strided_slice %9 {offsets = [0, 0], sizes = [1, 9], strides = [1, 1]} : vector<9x9xf32> to vector<1x9xf32>
    %15 = vector.broadcast %13 : vector<1x1xf32> to vector<1x9xf32>
    %16 = arith.divf %14, %15 : vector<1x9xf32>
    %17 = vector.extract_strided_slice %10 {offsets = [0, 0], sizes = [1, 1], strides = [1, 1]} : vector<9x1xf32> to vector<1x1xf32>
    %18 = arith.divf %17, %13 : vector<1x1xf32>
    %19 = vector.extract_strided_slice %9 {offsets = [0, 0], sizes = [9, 1], strides = [1, 1]} : vector<9x9xf32> to vector<9x1xf32>
    %c0_i32 = arith.constant 0 : i32
    %20 = vector.broadcast %c0_i32 : i32 to vector<9x9xi32>
    %21 = arith.cmpi eq, %11, %20 : vector<9x9xi32>
    %22 = vector.broadcast %19 : vector<9x1xf32> to vector<9x9xf32>
    %23 = vector.broadcast %16 : vector<1x9xf32> to vector<9x9xf32>
    %24 = arith.mulf %22, %23 : vector<9x9xf32>
    %25 = arith.subf %9, %24 : vector<9x9xf32>
    %26 = vector.shape_cast %16 : vector<1x9xf32> to vector<1x9xf32>
    %27 = vector.broadcast %26 : vector<1x9xf32> to vector<9x9xf32>
    %28 = arith.select %21, %27, %25 : vector<9x9xi1>, vector<9x9xf32>
    %c0_i32_7 = arith.constant 0 : i32
    %29 = vector.broadcast %c0_i32_7 : i32 to vector<9x1xi32>
    %30 = arith.cmpi eq, %12, %29 : vector<9x1xi32>
    %31 = vector.broadcast %18 : vector<1x1xf32> to vector<9x1xf32>
    %32 = arith.mulf %19, %31 : vector<9x1xf32>
    %33 = arith.subf %10, %32 : vector<9x1xf32>
    %34 = vector.shape_cast %18 : vector<1x1xf32> to vector<1x1xf32>
    %35 = vector.broadcast %34 : vector<1x1xf32> to vector<9x1xf32>
    %36 = arith.select %30, %35, %33 : vector<9x1xi1>, vector<9x1xf32>
    %37 = vector.extract_strided_slice %28 {offsets = [1, 1], sizes = [1, 1], strides = [1, 1]} : vector<9x9xf32> to vector<1x1xf32>
    %38 = vector.extract_strided_slice %28 {offsets = [1, 0], sizes = [1, 9], strides = [1, 1]} : vector<9x9xf32> to vector<1x9xf32>
    %39 = vector.broadcast %37 : vector<1x1xf32> to vector<1x9xf32>
    %40 = arith.divf %38, %39 : vector<1x9xf32>
    %41 = vector.extract_strided_slice %36 {offsets = [1, 0], sizes = [1, 1], strides = [1, 1]} : vector<9x1xf32> to vector<1x1xf32>
    %42 = arith.divf %41, %37 : vector<1x1xf32>
    %43 = vector.extract_strided_slice %28 {offsets = [0, 1], sizes = [9, 1], strides = [1, 1]} : vector<9x9xf32> to vector<9x1xf32>
    %c1_i32 = arith.constant 1 : i32
    %44 = vector.broadcast %c1_i32 : i32 to vector<9x9xi32>
    %45 = arith.cmpi eq, %11, %44 : vector<9x9xi32>
    %46 = vector.broadcast %43 : vector<9x1xf32> to vector<9x9xf32>
    %47 = vector.broadcast %40 : vector<1x9xf32> to vector<9x9xf32>
    %48 = arith.mulf %46, %47 : vector<9x9xf32>
    %49 = arith.subf %28, %48 : vector<9x9xf32>
    %50 = vector.shape_cast %40 : vector<1x9xf32> to vector<1x9xf32>
    %51 = vector.broadcast %50 : vector<1x9xf32> to vector<9x9xf32>
    %52 = arith.select %45, %51, %49 : vector<9x9xi1>, vector<9x9xf32>
    %c1_i32_8 = arith.constant 1 : i32
    %53 = vector.broadcast %c1_i32_8 : i32 to vector<9x1xi32>
    %54 = arith.cmpi eq, %12, %53 : vector<9x1xi32>
    %55 = vector.broadcast %42 : vector<1x1xf32> to vector<9x1xf32>
    %56 = arith.mulf %43, %55 : vector<9x1xf32>
    %57 = arith.subf %36, %56 : vector<9x1xf32>
    %58 = vector.shape_cast %42 : vector<1x1xf32> to vector<1x1xf32>
    %59 = vector.broadcast %58 : vector<1x1xf32> to vector<9x1xf32>
    %60 = arith.select %54, %59, %57 : vector<9x1xi1>, vector<9x1xf32>
    %61 = vector.extract_strided_slice %52 {offsets = [2, 2], sizes = [1, 1], strides = [1, 1]} : vector<9x9xf32> to vector<1x1xf32>
    %62 = vector.extract_strided_slice %52 {offsets = [2, 0], sizes = [1, 9], strides = [1, 1]} : vector<9x9xf32> to vector<1x9xf32>
    %63 = vector.broadcast %61 : vector<1x1xf32> to vector<1x9xf32>
    %64 = arith.divf %62, %63 : vector<1x9xf32>
    %65 = vector.extract_strided_slice %60 {offsets = [2, 0], sizes = [1, 1], strides = [1, 1]} : vector<9x1xf32> to vector<1x1xf32>
    %66 = arith.divf %65, %61 : vector<1x1xf32>
    %67 = vector.extract_strided_slice %52 {offsets = [0, 2], sizes = [9, 1], strides = [1, 1]} : vector<9x9xf32> to vector<9x1xf32>
    %c2_i32 = arith.constant 2 : i32
    %68 = vector.broadcast %c2_i32 : i32 to vector<9x9xi32>
    %69 = arith.cmpi eq, %11, %68 : vector<9x9xi32>
    %70 = vector.broadcast %67 : vector<9x1xf32> to vector<9x9xf32>
    %71 = vector.broadcast %64 : vector<1x9xf32> to vector<9x9xf32>
    %72 = arith.mulf %70, %71 : vector<9x9xf32>
    %73 = arith.subf %52, %72 : vector<9x9xf32>
    %74 = vector.shape_cast %64 : vector<1x9xf32> to vector<1x9xf32>
    %75 = vector.broadcast %74 : vector<1x9xf32> to vector<9x9xf32>
    %76 = arith.select %69, %75, %73 : vector<9x9xi1>, vector<9x9xf32>
    %c2_i32_9 = arith.constant 2 : i32
    %77 = vector.broadcast %c2_i32_9 : i32 to vector<9x1xi32>
    %78 = arith.cmpi eq, %12, %77 : vector<9x1xi32>
    %79 = vector.broadcast %66 : vector<1x1xf32> to vector<9x1xf32>
    %80 = arith.mulf %67, %79 : vector<9x1xf32>
    %81 = arith.subf %60, %80 : vector<9x1xf32>
    %82 = vector.shape_cast %66 : vector<1x1xf32> to vector<1x1xf32>
    %83 = vector.broadcast %82 : vector<1x1xf32> to vector<9x1xf32>
    %84 = arith.select %78, %83, %81 : vector<9x1xi1>, vector<9x1xf32>
    %85 = vector.extract_strided_slice %76 {offsets = [3, 3], sizes = [1, 1], strides = [1, 1]} : vector<9x9xf32> to vector<1x1xf32>
    %86 = vector.extract_strided_slice %76 {offsets = [3, 0], sizes = [1, 9], strides = [1, 1]} : vector<9x9xf32> to vector<1x9xf32>
    %87 = vector.broadcast %85 : vector<1x1xf32> to vector<1x9xf32>
    %88 = arith.divf %86, %87 : vector<1x9xf32>
    %89 = vector.extract_strided_slice %84 {offsets = [3, 0], sizes = [1, 1], strides = [1, 1]} : vector<9x1xf32> to vector<1x1xf32>
    %90 = arith.divf %89, %85 : vector<1x1xf32>
    %91 = vector.extract_strided_slice %76 {offsets = [0, 3], sizes = [9, 1], strides = [1, 1]} : vector<9x9xf32> to vector<9x1xf32>
    %c3_i32 = arith.constant 3 : i32
    %92 = vector.broadcast %c3_i32 : i32 to vector<9x9xi32>
    %93 = arith.cmpi eq, %11, %92 : vector<9x9xi32>
    %94 = vector.broadcast %91 : vector<9x1xf32> to vector<9x9xf32>
    %95 = vector.broadcast %88 : vector<1x9xf32> to vector<9x9xf32>
    %96 = arith.mulf %94, %95 : vector<9x9xf32>
    %97 = arith.subf %76, %96 : vector<9x9xf32>
    %98 = vector.shape_cast %88 : vector<1x9xf32> to vector<1x9xf32>
    %99 = vector.broadcast %98 : vector<1x9xf32> to vector<9x9xf32>
    %100 = arith.select %93, %99, %97 : vector<9x9xi1>, vector<9x9xf32>
    %c3_i32_10 = arith.constant 3 : i32
    %101 = vector.broadcast %c3_i32_10 : i32 to vector<9x1xi32>
    %102 = arith.cmpi eq, %12, %101 : vector<9x1xi32>
    %103 = vector.broadcast %90 : vector<1x1xf32> to vector<9x1xf32>
    %104 = arith.mulf %91, %103 : vector<9x1xf32>
    %105 = arith.subf %84, %104 : vector<9x1xf32>
    %106 = vector.shape_cast %90 : vector<1x1xf32> to vector<1x1xf32>
    %107 = vector.broadcast %106 : vector<1x1xf32> to vector<9x1xf32>
    %108 = arith.select %102, %107, %105 : vector<9x1xi1>, vector<9x1xf32>
    %109 = vector.extract_strided_slice %100 {offsets = [4, 4], sizes = [1, 1], strides = [1, 1]} : vector<9x9xf32> to vector<1x1xf32>
    %110 = vector.extract_strided_slice %100 {offsets = [4, 0], sizes = [1, 9], strides = [1, 1]} : vector<9x9xf32> to vector<1x9xf32>
    %111 = vector.broadcast %109 : vector<1x1xf32> to vector<1x9xf32>
    %112 = arith.divf %110, %111 : vector<1x9xf32>
    %113 = vector.extract_strided_slice %108 {offsets = [4, 0], sizes = [1, 1], strides = [1, 1]} : vector<9x1xf32> to vector<1x1xf32>
    %114 = arith.divf %113, %109 : vector<1x1xf32>
    %115 = vector.extract_strided_slice %100 {offsets = [0, 4], sizes = [9, 1], strides = [1, 1]} : vector<9x9xf32> to vector<9x1xf32>
    %c4_i32 = arith.constant 4 : i32
    %116 = vector.broadcast %c4_i32 : i32 to vector<9x9xi32>
    %117 = arith.cmpi eq, %11, %116 : vector<9x9xi32>
    %118 = vector.broadcast %115 : vector<9x1xf32> to vector<9x9xf32>
    %119 = vector.broadcast %112 : vector<1x9xf32> to vector<9x9xf32>
    %120 = arith.mulf %118, %119 : vector<9x9xf32>
    %121 = arith.subf %100, %120 : vector<9x9xf32>
    %122 = vector.shape_cast %112 : vector<1x9xf32> to vector<1x9xf32>
    %123 = vector.broadcast %122 : vector<1x9xf32> to vector<9x9xf32>
    %124 = arith.select %117, %123, %121 : vector<9x9xi1>, vector<9x9xf32>
    %c4_i32_11 = arith.constant 4 : i32
    %125 = vector.broadcast %c4_i32_11 : i32 to vector<9x1xi32>
    %126 = arith.cmpi eq, %12, %125 : vector<9x1xi32>
    %127 = vector.broadcast %114 : vector<1x1xf32> to vector<9x1xf32>
    %128 = arith.mulf %115, %127 : vector<9x1xf32>
    %129 = arith.subf %108, %128 : vector<9x1xf32>
    %130 = vector.shape_cast %114 : vector<1x1xf32> to vector<1x1xf32>
    %131 = vector.broadcast %130 : vector<1x1xf32> to vector<9x1xf32>
    %132 = arith.select %126, %131, %129 : vector<9x1xi1>, vector<9x1xf32>
    %133 = vector.extract_strided_slice %124 {offsets = [5, 5], sizes = [1, 1], strides = [1, 1]} : vector<9x9xf32> to vector<1x1xf32>
    %134 = vector.extract_strided_slice %124 {offsets = [5, 0], sizes = [1, 9], strides = [1, 1]} : vector<9x9xf32> to vector<1x9xf32>
    %135 = vector.broadcast %133 : vector<1x1xf32> to vector<1x9xf32>
    %136 = arith.divf %134, %135 : vector<1x9xf32>
    %137 = vector.extract_strided_slice %132 {offsets = [5, 0], sizes = [1, 1], strides = [1, 1]} : vector<9x1xf32> to vector<1x1xf32>
    %138 = arith.divf %137, %133 : vector<1x1xf32>
    %139 = vector.extract_strided_slice %124 {offsets = [0, 5], sizes = [9, 1], strides = [1, 1]} : vector<9x9xf32> to vector<9x1xf32>
    %c5_i32 = arith.constant 5 : i32
    %140 = vector.broadcast %c5_i32 : i32 to vector<9x9xi32>
    %141 = arith.cmpi eq, %11, %140 : vector<9x9xi32>
    %142 = vector.broadcast %139 : vector<9x1xf32> to vector<9x9xf32>
    %143 = vector.broadcast %136 : vector<1x9xf32> to vector<9x9xf32>
    %144 = arith.mulf %142, %143 : vector<9x9xf32>
    %145 = arith.subf %124, %144 : vector<9x9xf32>
    %146 = vector.shape_cast %136 : vector<1x9xf32> to vector<1x9xf32>
    %147 = vector.broadcast %146 : vector<1x9xf32> to vector<9x9xf32>
    %148 = arith.select %141, %147, %145 : vector<9x9xi1>, vector<9x9xf32>
    %c5_i32_12 = arith.constant 5 : i32
    %149 = vector.broadcast %c5_i32_12 : i32 to vector<9x1xi32>
    %150 = arith.cmpi eq, %12, %149 : vector<9x1xi32>
    %151 = vector.broadcast %138 : vector<1x1xf32> to vector<9x1xf32>
    %152 = arith.mulf %139, %151 : vector<9x1xf32>
    %153 = arith.subf %132, %152 : vector<9x1xf32>
    %154 = vector.shape_cast %138 : vector<1x1xf32> to vector<1x1xf32>
    %155 = vector.broadcast %154 : vector<1x1xf32> to vector<9x1xf32>
    %156 = arith.select %150, %155, %153 : vector<9x1xi1>, vector<9x1xf32>
    %157 = vector.extract_strided_slice %148 {offsets = [6, 6], sizes = [1, 1], strides = [1, 1]} : vector<9x9xf32> to vector<1x1xf32>
    %158 = vector.extract_strided_slice %148 {offsets = [6, 0], sizes = [1, 9], strides = [1, 1]} : vector<9x9xf32> to vector<1x9xf32>
    %159 = vector.broadcast %157 : vector<1x1xf32> to vector<1x9xf32>
    %160 = arith.divf %158, %159 : vector<1x9xf32>
    %161 = vector.extract_strided_slice %156 {offsets = [6, 0], sizes = [1, 1], strides = [1, 1]} : vector<9x1xf32> to vector<1x1xf32>
    %162 = arith.divf %161, %157 : vector<1x1xf32>
    %163 = vector.extract_strided_slice %148 {offsets = [0, 6], sizes = [9, 1], strides = [1, 1]} : vector<9x9xf32> to vector<9x1xf32>
    %c6_i32 = arith.constant 6 : i32
    %164 = vector.broadcast %c6_i32 : i32 to vector<9x9xi32>
    %165 = arith.cmpi eq, %11, %164 : vector<9x9xi32>
    %166 = vector.broadcast %163 : vector<9x1xf32> to vector<9x9xf32>
    %167 = vector.broadcast %160 : vector<1x9xf32> to vector<9x9xf32>
    %168 = arith.mulf %166, %167 : vector<9x9xf32>
    %169 = arith.subf %148, %168 : vector<9x9xf32>
    %170 = vector.shape_cast %160 : vector<1x9xf32> to vector<1x9xf32>
    %171 = vector.broadcast %170 : vector<1x9xf32> to vector<9x9xf32>
    %172 = arith.select %165, %171, %169 : vector<9x9xi1>, vector<9x9xf32>
    %c6_i32_13 = arith.constant 6 : i32
    %173 = vector.broadcast %c6_i32_13 : i32 to vector<9x1xi32>
    %174 = arith.cmpi eq, %12, %173 : vector<9x1xi32>
    %175 = vector.broadcast %162 : vector<1x1xf32> to vector<9x1xf32>
    %176 = arith.mulf %163, %175 : vector<9x1xf32>
    %177 = arith.subf %156, %176 : vector<9x1xf32>
    %178 = vector.shape_cast %162 : vector<1x1xf32> to vector<1x1xf32>
    %179 = vector.broadcast %178 : vector<1x1xf32> to vector<9x1xf32>
    %180 = arith.select %174, %179, %177 : vector<9x1xi1>, vector<9x1xf32>
    %181 = vector.extract_strided_slice %172 {offsets = [7, 7], sizes = [1, 1], strides = [1, 1]} : vector<9x9xf32> to vector<1x1xf32>
    %182 = vector.extract_strided_slice %172 {offsets = [7, 0], sizes = [1, 9], strides = [1, 1]} : vector<9x9xf32> to vector<1x9xf32>
    %183 = vector.broadcast %181 : vector<1x1xf32> to vector<1x9xf32>
    %184 = arith.divf %182, %183 : vector<1x9xf32>
    %185 = vector.extract_strided_slice %180 {offsets = [7, 0], sizes = [1, 1], strides = [1, 1]} : vector<9x1xf32> to vector<1x1xf32>
    %186 = arith.divf %185, %181 : vector<1x1xf32>
    %187 = vector.extract_strided_slice %172 {offsets = [0, 7], sizes = [9, 1], strides = [1, 1]} : vector<9x9xf32> to vector<9x1xf32>
    %c7_i32 = arith.constant 7 : i32
    %188 = vector.broadcast %c7_i32 : i32 to vector<9x9xi32>
    %189 = arith.cmpi eq, %11, %188 : vector<9x9xi32>
    %190 = vector.broadcast %187 : vector<9x1xf32> to vector<9x9xf32>
    %191 = vector.broadcast %184 : vector<1x9xf32> to vector<9x9xf32>
    %192 = arith.mulf %190, %191 : vector<9x9xf32>
    %193 = arith.subf %172, %192 : vector<9x9xf32>
    %194 = vector.shape_cast %184 : vector<1x9xf32> to vector<1x9xf32>
    %195 = vector.broadcast %194 : vector<1x9xf32> to vector<9x9xf32>
    %196 = arith.select %189, %195, %193 : vector<9x9xi1>, vector<9x9xf32>
    %c7_i32_14 = arith.constant 7 : i32
    %197 = vector.broadcast %c7_i32_14 : i32 to vector<9x1xi32>
    %198 = arith.cmpi eq, %12, %197 : vector<9x1xi32>
    %199 = vector.broadcast %186 : vector<1x1xf32> to vector<9x1xf32>
    %200 = arith.mulf %187, %199 : vector<9x1xf32>
    %201 = arith.subf %180, %200 : vector<9x1xf32>
    %202 = vector.shape_cast %186 : vector<1x1xf32> to vector<1x1xf32>
    %203 = vector.broadcast %202 : vector<1x1xf32> to vector<9x1xf32>
    %204 = arith.select %198, %203, %201 : vector<9x1xi1>, vector<9x1xf32>
    %205 = vector.extract_strided_slice %196 {offsets = [8, 8], sizes = [1, 1], strides = [1, 1]} : vector<9x9xf32> to vector<1x1xf32>
    %206 = vector.extract_strided_slice %204 {offsets = [8, 0], sizes = [1, 1], strides = [1, 1]} : vector<9x1xf32> to vector<1x1xf32>
    %207 = arith.divf %206, %205 : vector<1x1xf32>
    %208 = vector.extract_strided_slice %196 {offsets = [0, 8], sizes = [9, 1], strides = [1, 1]} : vector<9x9xf32> to vector<9x1xf32>
    %c8_i32 = arith.constant 8 : i32
    %209 = vector.broadcast %c8_i32 : i32 to vector<9x1xi32>
    %210 = arith.cmpi eq, %12, %209 : vector<9x1xi32>
    %211 = vector.broadcast %207 : vector<1x1xf32> to vector<9x1xf32>
    %212 = arith.mulf %208, %211 : vector<9x1xf32>
    %213 = arith.subf %204, %212 : vector<9x1xf32>
    %214 = vector.shape_cast %207 : vector<1x1xf32> to vector<1x1xf32>
    %215 = vector.broadcast %214 : vector<1x1xf32> to vector<9x1xf32>
    %216 = arith.select %210, %215, %213 : vector<9x1xi1>, vector<9x1xf32>
    %cst_15 = arith.constant dense<0.000000e+00> : vector<64x1xf32>
    %217 = tpu.matmul %2, %216, %cst_15 {dimension_numbers = #tpu.dot_dimension_numbers<[1], [0], [0], [1], [0, 0, 1, 1], [], []>} : vector<64x9xf32>, vector<9x1xf32>, vector<64x1xf32> -> vector<64x1xf32>
    %cst_16 = arith.constant 0.000000e+00 : f32
    %218 = vector.broadcast %cst_16 : f32 to vector<64x1xf32>
    %219 = arith.subf %218, %217 : vector<64x1xf32>
    %cst_17 = arith.constant 0.000000e+00 : f32
    %220 = vector.broadcast %cst_17 : f32 to vector<64x1xf32>
    %221 = arith.maximumf %219, %220 : vector<64x1xf32>
    %222 = math.absf %219 : vector<64x1xf32>
    %cst_18 = arith.constant 0.000000e+00 : f32
    %223 = vector.broadcast %cst_18 : f32 to vector<64x1xf32>
    %224 = arith.subf %223, %222 : vector<64x1xf32>
    %225 = math.exp %224 : vector<64x1xf32>
    %cst_19 = arith.constant 1.000000e+00 : f32
    %226 = vector.broadcast %cst_19 : f32 to vector<64x1xf32>
    %227 = arith.addf %226, %225 : vector<64x1xf32>
    %228 = math.log %227 : vector<64x1xf32>
    %229 = arith.addf %221, %228 : vector<64x1xf32>
    %cst_20 = arith.constant 0.000000e+00 : f32
    %230 = vector.broadcast %cst_20 : f32 to vector<64x1xf32>
    %231 = arith.subf %230, %229 : vector<64x1xf32>
    %cst_21 = arith.constant -1.000000e+02 : f32
    %232 = vector.broadcast %cst_21 : f32 to vector<64x1xf32>
    %233 = arith.maximumf %231, %232 : vector<64x1xf32>
    %cst_22 = arith.constant 0.000000e+00 : f32
    %234 = vector.broadcast %cst_22 : f32 to vector<64x1xf32>
    %235 = arith.maximumf %217, %234 : vector<64x1xf32>
    %236 = math.absf %217 : vector<64x1xf32>
    %cst_23 = arith.constant 0.000000e+00 : f32
    %237 = vector.broadcast %cst_23 : f32 to vector<64x1xf32>
    %238 = arith.subf %237, %236 : vector<64x1xf32>
    %239 = math.exp %238 : vector<64x1xf32>
    %cst_24 = arith.constant 1.000000e+00 : f32
    %240 = vector.broadcast %cst_24 : f32 to vector<64x1xf32>
    %241 = arith.addf %240, %239 : vector<64x1xf32>
    %242 = math.log %241 : vector<64x1xf32>
    %243 = arith.addf %235, %242 : vector<64x1xf32>
    %cst_25 = arith.constant 0.000000e+00 : f32
    %244 = vector.broadcast %cst_25 : f32 to vector<64x1xf32>
    %245 = arith.subf %244, %243 : vector<64x1xf32>
    %cst_26 = arith.constant -1.000000e+02 : f32
    %246 = vector.broadcast %cst_26 : f32 to vector<64x1xf32>
    %247 = arith.maximumf %245, %246 : vector<64x1xf32>
    %248 = arith.mulf %8, %233 : vector<64x1xf32>
    %cst_27 = arith.constant 1.000000e+00 : f32
    %249 = vector.broadcast %cst_27 : f32 to vector<64x1xf32>
    %250 = arith.subf %249, %8 : vector<64x1xf32>
    %251 = arith.mulf %250, %247 : vector<64x1xf32>
    %252 = arith.addf %248, %251 : vector<64x1xf32>
    %cst_28 = arith.constant 0.000000e+00 : f32
    %253 = vector.broadcast %cst_28 : f32 to vector<64x1xf32>
    %254 = arith.subf %253, %252 : vector<64x1xf32>
    %255 = vector.shape_cast %254 : vector<64x1xf32> to vector<1x64x1xf32>
    %cst_29 = arith.constant dense<0.000000e+00> : vector<1xf32>
    %256 = vector.multi_reduction <add>, %255, %cst_29 [1, 2] : vector<1x64x1xf32> to vector<1xf32>
    %257 = vector.shape_cast %256 : vector<1xf32> to vector<1x1x1xf32>
    %258 = vector.extract %257[0, 0, 0] : f32 from vector<1x1x1xf32>
    %cst_30 = arith.constant 0.000000e+00 : f32
    %259 = arith.addf %cst_30, %258 : f32
    %c1 = arith.constant 1 : index
    %c0_31 = arith.constant 0 : index
    %c0_32 = arith.constant 0 : index
    %260 = vector.load %arg1[%c1, %c0_31, %c0_32] : memref<2x64x9xf32, #tpu.memory_space<vmem>>, vector<1x64x9xf32>
    %261 = vector.shape_cast %260 : vector<1x64x9xf32> to vector<64x9xf32>
    %cst_33 = arith.constant dense<0.000000e+00> : vector<64x1xf32>
    %262 = tpu.matmul %261, %0, %cst_33 {dimension_numbers = #tpu.dot_dimension_numbers<[1], [0], [0], [1], [0, 0, 1, 1], [], []>} : vector<64x9xf32>, vector<9x1xf32>, vector<64x1xf32> -> vector<64x1xf32>
    %263 = arith.negf %262 : vector<64x1xf32>
    %264 = math.exp %263 : vector<64x1xf32>
    %cst_34 = arith.constant 1.000000e+00 : f32
    %265 = vector.broadcast %cst_34 : f32 to vector<64x1xf32>
    %266 = arith.addf %265, %264 : vector<64x1xf32>
    %267 = arith.divf %265, %266 : vector<64x1xf32>
    %cst_35 = arith.constant dense<0.000000e+00> : vector<9x9xf32>
    %268 = tpu.matmul %261, %261, %cst_35 {dimension_numbers = #tpu.dot_dimension_numbers<[0], [0], [1], [1], [0, 1, 1, 1], [], []>} : vector<64x9xf32>, vector<64x9xf32>, vector<9x9xf32> -> vector<9x9xf32>
    %cst_36 = arith.constant dense<0.000000e+00> : vector<9x1xf32>
    %269 = tpu.matmul %261, %267, %cst_36 {dimension_numbers = #tpu.dot_dimension_numbers<[0], [0], [1], [1], [0, 1, 1, 1], [], []>} : vector<64x9xf32>, vector<64x1xf32>, vector<9x1xf32> -> vector<9x1xf32>
    %270 = tpu.iota {dimensions = array<i32: 0>} : vector<9x9xi32>
    %271 = tpu.iota {dimensions = array<i32: 0>} : vector<9x1xi32>
    %272 = vector.extract_strided_slice %268 {offsets = [0, 0], sizes = [1, 1], strides = [1, 1]} : vector<9x9xf32> to vector<1x1xf32>
    %273 = vector.extract_strided_slice %268 {offsets = [0, 0], sizes = [1, 9], strides = [1, 1]} : vector<9x9xf32> to vector<1x9xf32>
    %274 = vector.broadcast %272 : vector<1x1xf32> to vector<1x9xf32>
    %275 = arith.divf %273, %274 : vector<1x9xf32>
    %276 = vector.extract_strided_slice %269 {offsets = [0, 0], sizes = [1, 1], strides = [1, 1]} : vector<9x1xf32> to vector<1x1xf32>
    %277 = arith.divf %276, %272 : vector<1x1xf32>
    %278 = vector.extract_strided_slice %268 {offsets = [0, 0], sizes = [9, 1], strides = [1, 1]} : vector<9x9xf32> to vector<9x1xf32>
    %c0_i32_37 = arith.constant 0 : i32
    %279 = vector.broadcast %c0_i32_37 : i32 to vector<9x9xi32>
    %280 = arith.cmpi eq, %270, %279 : vector<9x9xi32>
    %281 = vector.broadcast %278 : vector<9x1xf32> to vector<9x9xf32>
    %282 = vector.broadcast %275 : vector<1x9xf32> to vector<9x9xf32>
    %283 = arith.mulf %281, %282 : vector<9x9xf32>
    %284 = arith.subf %268, %283 : vector<9x9xf32>
    %285 = vector.shape_cast %275 : vector<1x9xf32> to vector<1x9xf32>
    %286 = vector.broadcast %285 : vector<1x9xf32> to vector<9x9xf32>
    %287 = arith.select %280, %286, %284 : vector<9x9xi1>, vector<9x9xf32>
    %c0_i32_38 = arith.constant 0 : i32
    %288 = vector.broadcast %c0_i32_38 : i32 to vector<9x1xi32>
    %289 = arith.cmpi eq, %271, %288 : vector<9x1xi32>
    %290 = vector.broadcast %277 : vector<1x1xf32> to vector<9x1xf32>
    %291 = arith.mulf %278, %290 : vector<9x1xf32>
    %292 = arith.subf %269, %291 : vector<9x1xf32>
    %293 = vector.shape_cast %277 : vector<1x1xf32> to vector<1x1xf32>
    %294 = vector.broadcast %293 : vector<1x1xf32> to vector<9x1xf32>
    %295 = arith.select %289, %294, %292 : vector<9x1xi1>, vector<9x1xf32>
    %296 = vector.extract_strided_slice %287 {offsets = [1, 1], sizes = [1, 1], strides = [1, 1]} : vector<9x9xf32> to vector<1x1xf32>
    %297 = vector.extract_strided_slice %287 {offsets = [1, 0], sizes = [1, 9], strides = [1, 1]} : vector<9x9xf32> to vector<1x9xf32>
    %298 = vector.broadcast %296 : vector<1x1xf32> to vector<1x9xf32>
    %299 = arith.divf %297, %298 : vector<1x9xf32>
    %300 = vector.extract_strided_slice %295 {offsets = [1, 0], sizes = [1, 1], strides = [1, 1]} : vector<9x1xf32> to vector<1x1xf32>
    %301 = arith.divf %300, %296 : vector<1x1xf32>
    %302 = vector.extract_strided_slice %287 {offsets = [0, 1], sizes = [9, 1], strides = [1, 1]} : vector<9x9xf32> to vector<9x1xf32>
    %c1_i32_39 = arith.constant 1 : i32
    %303 = vector.broadcast %c1_i32_39 : i32 to vector<9x9xi32>
    %304 = arith.cmpi eq, %270, %303 : vector<9x9xi32>
    %305 = vector.broadcast %302 : vector<9x1xf32> to vector<9x9xf32>
    %306 = vector.broadcast %299 : vector<1x9xf32> to vector<9x9xf32>
    %307 = arith.mulf %305, %306 : vector<9x9xf32>
    %308 = arith.subf %287, %307 : vector<9x9xf32>
    %309 = vector.shape_cast %299 : vector<1x9xf32> to vector<1x9xf32>
    %310 = vector.broadcast %309 : vector<1x9xf32> to vector<9x9xf32>
    %311 = arith.select %304, %310, %308 : vector<9x9xi1>, vector<9x9xf32>
    %c1_i32_40 = arith.constant 1 : i32
    %312 = vector.broadcast %c1_i32_40 : i32 to vector<9x1xi32>
    %313 = arith.cmpi eq, %271, %312 : vector<9x1xi32>
    %314 = vector.broadcast %301 : vector<1x1xf32> to vector<9x1xf32>
    %315 = arith.mulf %302, %314 : vector<9x1xf32>
    %316 = arith.subf %295, %315 : vector<9x1xf32>
    %317 = vector.shape_cast %301 : vector<1x1xf32> to vector<1x1xf32>
    %318 = vector.broadcast %317 : vector<1x1xf32> to vector<9x1xf32>
    %319 = arith.select %313, %318, %316 : vector<9x1xi1>, vector<9x1xf32>
    %320 = vector.extract_strided_slice %311 {offsets = [2, 2], sizes = [1, 1], strides = [1, 1]} : vector<9x9xf32> to vector<1x1xf32>
    %321 = vector.extract_strided_slice %311 {offsets = [2, 0], sizes = [1, 9], strides = [1, 1]} : vector<9x9xf32> to vector<1x9xf32>
    %322 = vector.broadcast %320 : vector<1x1xf32> to vector<1x9xf32>
    %323 = arith.divf %321, %322 : vector<1x9xf32>
    %324 = vector.extract_strided_slice %319 {offsets = [2, 0], sizes = [1, 1], strides = [1, 1]} : vector<9x1xf32> to vector<1x1xf32>
    %325 = arith.divf %324, %320 : vector<1x1xf32>
    %326 = vector.extract_strided_slice %311 {offsets = [0, 2], sizes = [9, 1], strides = [1, 1]} : vector<9x9xf32> to vector<9x1xf32>
    %c2_i32_41 = arith.constant 2 : i32
    %327 = vector.broadcast %c2_i32_41 : i32 to vector<9x9xi32>
    %328 = arith.cmpi eq, %270, %327 : vector<9x9xi32>
    %329 = vector.broadcast %326 : vector<9x1xf32> to vector<9x9xf32>
    %330 = vector.broadcast %323 : vector<1x9xf32> to vector<9x9xf32>
    %331 = arith.mulf %329, %330 : vector<9x9xf32>
    %332 = arith.subf %311, %331 : vector<9x9xf32>
    %333 = vector.shape_cast %323 : vector<1x9xf32> to vector<1x9xf32>
    %334 = vector.broadcast %333 : vector<1x9xf32> to vector<9x9xf32>
    %335 = arith.select %328, %334, %332 : vector<9x9xi1>, vector<9x9xf32>
    %c2_i32_42 = arith.constant 2 : i32
    %336 = vector.broadcast %c2_i32_42 : i32 to vector<9x1xi32>
    %337 = arith.cmpi eq, %271, %336 : vector<9x1xi32>
    %338 = vector.broadcast %325 : vector<1x1xf32> to vector<9x1xf32>
    %339 = arith.mulf %326, %338 : vector<9x1xf32>
    %340 = arith.subf %319, %339 : vector<9x1xf32>
    %341 = vector.shape_cast %325 : vector<1x1xf32> to vector<1x1xf32>
    %342 = vector.broadcast %341 : vector<1x1xf32> to vector<9x1xf32>
    %343 = arith.select %337, %342, %340 : vector<9x1xi1>, vector<9x1xf32>
    %344 = vector.extract_strided_slice %335 {offsets = [3, 3], sizes = [1, 1], strides = [1, 1]} : vector<9x9xf32> to vector<1x1xf32>
    %345 = vector.extract_strided_slice %335 {offsets = [3, 0], sizes = [1, 9], strides = [1, 1]} : vector<9x9xf32> to vector<1x9xf32>
    %346 = vector.broadcast %344 : vector<1x1xf32> to vector<1x9xf32>
    %347 = arith.divf %345, %346 : vector<1x9xf32>
    %348 = vector.extract_strided_slice %343 {offsets = [3, 0], sizes = [1, 1], strides = [1, 1]} : vector<9x1xf32> to vector<1x1xf32>
    %349 = arith.divf %348, %344 : vector<1x1xf32>
    %350 = vector.extract_strided_slice %335 {offsets = [0, 3], sizes = [9, 1], strides = [1, 1]} : vector<9x9xf32> to vector<9x1xf32>
    %c3_i32_43 = arith.constant 3 : i32
    %351 = vector.broadcast %c3_i32_43 : i32 to vector<9x9xi32>
    %352 = arith.cmpi eq, %270, %351 : vector<9x9xi32>
    %353 = vector.broadcast %350 : vector<9x1xf32> to vector<9x9xf32>
    %354 = vector.broadcast %347 : vector<1x9xf32> to vector<9x9xf32>
    %355 = arith.mulf %353, %354 : vector<9x9xf32>
    %356 = arith.subf %335, %355 : vector<9x9xf32>
    %357 = vector.shape_cast %347 : vector<1x9xf32> to vector<1x9xf32>
    %358 = vector.broadcast %357 : vector<1x9xf32> to vector<9x9xf32>
    %359 = arith.select %352, %358, %356 : vector<9x9xi1>, vector<9x9xf32>
    %c3_i32_44 = arith.constant 3 : i32
    %360 = vector.broadcast %c3_i32_44 : i32 to vector<9x1xi32>
    %361 = arith.cmpi eq, %271, %360 : vector<9x1xi32>
    %362 = vector.broadcast %349 : vector<1x1xf32> to vector<9x1xf32>
    %363 = arith.mulf %350, %362 : vector<9x1xf32>
    %364 = arith.subf %343, %363 : vector<9x1xf32>
    %365 = vector.shape_cast %349 : vector<1x1xf32> to vector<1x1xf32>
    %366 = vector.broadcast %365 : vector<1x1xf32> to vector<9x1xf32>
    %367 = arith.select %361, %366, %364 : vector<9x1xi1>, vector<9x1xf32>
    %368 = vector.extract_strided_slice %359 {offsets = [4, 4], sizes = [1, 1], strides = [1, 1]} : vector<9x9xf32> to vector<1x1xf32>
    %369 = vector.extract_strided_slice %359 {offsets = [4, 0], sizes = [1, 9], strides = [1, 1]} : vector<9x9xf32> to vector<1x9xf32>
    %370 = vector.broadcast %368 : vector<1x1xf32> to vector<1x9xf32>
    %371 = arith.divf %369, %370 : vector<1x9xf32>
    %372 = vector.extract_strided_slice %367 {offsets = [4, 0], sizes = [1, 1], strides = [1, 1]} : vector<9x1xf32> to vector<1x1xf32>
    %373 = arith.divf %372, %368 : vector<1x1xf32>
    %374 = vector.extract_strided_slice %359 {offsets = [0, 4], sizes = [9, 1], strides = [1, 1]} : vector<9x9xf32> to vector<9x1xf32>
    %c4_i32_45 = arith.constant 4 : i32
    %375 = vector.broadcast %c4_i32_45 : i32 to vector<9x9xi32>
    %376 = arith.cmpi eq, %270, %375 : vector<9x9xi32>
    %377 = vector.broadcast %374 : vector<9x1xf32> to vector<9x9xf32>
    %378 = vector.broadcast %371 : vector<1x9xf32> to vector<9x9xf32>
    %379 = arith.mulf %377, %378 : vector<9x9xf32>
    %380 = arith.subf %359, %379 : vector<9x9xf32>
    %381 = vector.shape_cast %371 : vector<1x9xf32> to vector<1x9xf32>
    %382 = vector.broadcast %381 : vector<1x9xf32> to vector<9x9xf32>
    %383 = arith.select %376, %382, %380 : vector<9x9xi1>, vector<9x9xf32>
    %c4_i32_46 = arith.constant 4 : i32
    %384 = vector.broadcast %c4_i32_46 : i32 to vector<9x1xi32>
    %385 = arith.cmpi eq, %271, %384 : vector<9x1xi32>
    %386 = vector.broadcast %373 : vector<1x1xf32> to vector<9x1xf32>
    %387 = arith.mulf %374, %386 : vector<9x1xf32>
    %388 = arith.subf %367, %387 : vector<9x1xf32>
    %389 = vector.shape_cast %373 : vector<1x1xf32> to vector<1x1xf32>
    %390 = vector.broadcast %389 : vector<1x1xf32> to vector<9x1xf32>
    %391 = arith.select %385, %390, %388 : vector<9x1xi1>, vector<9x1xf32>
    %392 = vector.extract_strided_slice %383 {offsets = [5, 5], sizes = [1, 1], strides = [1, 1]} : vector<9x9xf32> to vector<1x1xf32>
    %393 = vector.extract_strided_slice %383 {offsets = [5, 0], sizes = [1, 9], strides = [1, 1]} : vector<9x9xf32> to vector<1x9xf32>
    %394 = vector.broadcast %392 : vector<1x1xf32> to vector<1x9xf32>
    %395 = arith.divf %393, %394 : vector<1x9xf32>
    %396 = vector.extract_strided_slice %391 {offsets = [5, 0], sizes = [1, 1], strides = [1, 1]} : vector<9x1xf32> to vector<1x1xf32>
    %397 = arith.divf %396, %392 : vector<1x1xf32>
    %398 = vector.extract_strided_slice %383 {offsets = [0, 5], sizes = [9, 1], strides = [1, 1]} : vector<9x9xf32> to vector<9x1xf32>
    %c5_i32_47 = arith.constant 5 : i32
    %399 = vector.broadcast %c5_i32_47 : i32 to vector<9x9xi32>
    %400 = arith.cmpi eq, %270, %399 : vector<9x9xi32>
    %401 = vector.broadcast %398 : vector<9x1xf32> to vector<9x9xf32>
    %402 = vector.broadcast %395 : vector<1x9xf32> to vector<9x9xf32>
    %403 = arith.mulf %401, %402 : vector<9x9xf32>
    %404 = arith.subf %383, %403 : vector<9x9xf32>
    %405 = vector.shape_cast %395 : vector<1x9xf32> to vector<1x9xf32>
    %406 = vector.broadcast %405 : vector<1x9xf32> to vector<9x9xf32>
    %407 = arith.select %400, %406, %404 : vector<9x9xi1>, vector<9x9xf32>
    %c5_i32_48 = arith.constant 5 : i32
    %408 = vector.broadcast %c5_i32_48 : i32 to vector<9x1xi32>
    %409 = arith.cmpi eq, %271, %408 : vector<9x1xi32>
    %410 = vector.broadcast %397 : vector<1x1xf32> to vector<9x1xf32>
    %411 = arith.mulf %398, %410 : vector<9x1xf32>
    %412 = arith.subf %391, %411 : vector<9x1xf32>
    %413 = vector.shape_cast %397 : vector<1x1xf32> to vector<1x1xf32>
    %414 = vector.broadcast %413 : vector<1x1xf32> to vector<9x1xf32>
    %415 = arith.select %409, %414, %412 : vector<9x1xi1>, vector<9x1xf32>
    %416 = vector.extract_strided_slice %407 {offsets = [6, 6], sizes = [1, 1], strides = [1, 1]} : vector<9x9xf32> to vector<1x1xf32>
    %417 = vector.extract_strided_slice %407 {offsets = [6, 0], sizes = [1, 9], strides = [1, 1]} : vector<9x9xf32> to vector<1x9xf32>
    %418 = vector.broadcast %416 : vector<1x1xf32> to vector<1x9xf32>
    %419 = arith.divf %417, %418 : vector<1x9xf32>
    %420 = vector.extract_strided_slice %415 {offsets = [6, 0], sizes = [1, 1], strides = [1, 1]} : vector<9x1xf32> to vector<1x1xf32>
    %421 = arith.divf %420, %416 : vector<1x1xf32>
    %422 = vector.extract_strided_slice %407 {offsets = [0, 6], sizes = [9, 1], strides = [1, 1]} : vector<9x9xf32> to vector<9x1xf32>
    %c6_i32_49 = arith.constant 6 : i32
    %423 = vector.broadcast %c6_i32_49 : i32 to vector<9x9xi32>
    %424 = arith.cmpi eq, %270, %423 : vector<9x9xi32>
    %425 = vector.broadcast %422 : vector<9x1xf32> to vector<9x9xf32>
    %426 = vector.broadcast %419 : vector<1x9xf32> to vector<9x9xf32>
    %427 = arith.mulf %425, %426 : vector<9x9xf32>
    %428 = arith.subf %407, %427 : vector<9x9xf32>
    %429 = vector.shape_cast %419 : vector<1x9xf32> to vector<1x9xf32>
    %430 = vector.broadcast %429 : vector<1x9xf32> to vector<9x9xf32>
    %431 = arith.select %424, %430, %428 : vector<9x9xi1>, vector<9x9xf32>
    %c6_i32_50 = arith.constant 6 : i32
    %432 = vector.broadcast %c6_i32_50 : i32 to vector<9x1xi32>
    %433 = arith.cmpi eq, %271, %432 : vector<9x1xi32>
    %434 = vector.broadcast %421 : vector<1x1xf32> to vector<9x1xf32>
    %435 = arith.mulf %422, %434 : vector<9x1xf32>
    %436 = arith.subf %415, %435 : vector<9x1xf32>
    %437 = vector.shape_cast %421 : vector<1x1xf32> to vector<1x1xf32>
    %438 = vector.broadcast %437 : vector<1x1xf32> to vector<9x1xf32>
    %439 = arith.select %433, %438, %436 : vector<9x1xi1>, vector<9x1xf32>
    %440 = vector.extract_strided_slice %431 {offsets = [7, 7], sizes = [1, 1], strides = [1, 1]} : vector<9x9xf32> to vector<1x1xf32>
    %441 = vector.extract_strided_slice %431 {offsets = [7, 0], sizes = [1, 9], strides = [1, 1]} : vector<9x9xf32> to vector<1x9xf32>
    %442 = vector.broadcast %440 : vector<1x1xf32> to vector<1x9xf32>
    %443 = arith.divf %441, %442 : vector<1x9xf32>
    %444 = vector.extract_strided_slice %439 {offsets = [7, 0], sizes = [1, 1], strides = [1, 1]} : vector<9x1xf32> to vector<1x1xf32>
    %445 = arith.divf %444, %440 : vector<1x1xf32>
    %446 = vector.extract_strided_slice %431 {offsets = [0, 7], sizes = [9, 1], strides = [1, 1]} : vector<9x9xf32> to vector<9x1xf32>
    %c7_i32_51 = arith.constant 7 : i32
    %447 = vector.broadcast %c7_i32_51 : i32 to vector<9x9xi32>
    %448 = arith.cmpi eq, %270, %447 : vector<9x9xi32>
    %449 = vector.broadcast %446 : vector<9x1xf32> to vector<9x9xf32>
    %450 = vector.broadcast %443 : vector<1x9xf32> to vector<9x9xf32>
    %451 = arith.mulf %449, %450 : vector<9x9xf32>
    %452 = arith.subf %431, %451 : vector<9x9xf32>
    %453 = vector.shape_cast %443 : vector<1x9xf32> to vector<1x9xf32>
    %454 = vector.broadcast %453 : vector<1x9xf32> to vector<9x9xf32>
    %455 = arith.select %448, %454, %452 : vector<9x9xi1>, vector<9x9xf32>
    %c7_i32_52 = arith.constant 7 : i32
    %456 = vector.broadcast %c7_i32_52 : i32 to vector<9x1xi32>
    %457 = arith.cmpi eq, %271, %456 : vector<9x1xi32>
    %458 = vector.broadcast %445 : vector<1x1xf32> to vector<9x1xf32>
    %459 = arith.mulf %446, %458 : vector<9x1xf32>
    %460 = arith.subf %439, %459 : vector<9x1xf32>
    %461 = vector.shape_cast %445 : vector<1x1xf32> to vector<1x1xf32>
    %462 = vector.broadcast %461 : vector<1x1xf32> to vector<9x1xf32>
    %463 = arith.select %457, %462, %460 : vector<9x1xi1>, vector<9x1xf32>
    %464 = vector.extract_strided_slice %455 {offsets = [8, 8], sizes = [1, 1], strides = [1, 1]} : vector<9x9xf32> to vector<1x1xf32>
    %465 = vector.extract_strided_slice %463 {offsets = [8, 0], sizes = [1, 1], strides = [1, 1]} : vector<9x1xf32> to vector<1x1xf32>
    %466 = arith.divf %465, %464 : vector<1x1xf32>
    %467 = vector.extract_strided_slice %455 {offsets = [0, 8], sizes = [9, 1], strides = [1, 1]} : vector<9x9xf32> to vector<9x1xf32>
    %c8_i32_53 = arith.constant 8 : i32
    %468 = vector.broadcast %c8_i32_53 : i32 to vector<9x1xi32>
    %469 = arith.cmpi eq, %271, %468 : vector<9x1xi32>
    %470 = vector.broadcast %466 : vector<1x1xf32> to vector<9x1xf32>
    %471 = arith.mulf %467, %470 : vector<9x1xf32>
    %472 = arith.subf %463, %471 : vector<9x1xf32>
    %473 = vector.shape_cast %466 : vector<1x1xf32> to vector<1x1xf32>
    %474 = vector.broadcast %473 : vector<1x1xf32> to vector<9x1xf32>
    %475 = arith.select %469, %474, %472 : vector<9x1xi1>, vector<9x1xf32>
    %cst_54 = arith.constant dense<0.000000e+00> : vector<64x1xf32>
    %476 = tpu.matmul %261, %475, %cst_54 {dimension_numbers = #tpu.dot_dimension_numbers<[1], [0], [0], [1], [0, 0, 1, 1], [], []>} : vector<64x9xf32>, vector<9x1xf32>, vector<64x1xf32> -> vector<64x1xf32>
    %cst_55 = arith.constant 0.000000e+00 : f32
    %477 = vector.broadcast %cst_55 : f32 to vector<64x1xf32>
    %478 = arith.subf %477, %476 : vector<64x1xf32>
    %cst_56 = arith.constant 0.000000e+00 : f32
    %479 = vector.broadcast %cst_56 : f32 to vector<64x1xf32>
    %480 = arith.maximumf %478, %479 : vector<64x1xf32>
    %481 = math.absf %478 : vector<64x1xf32>
    %cst_57 = arith.constant 0.000000e+00 : f32
    %482 = vector.broadcast %cst_57 : f32 to vector<64x1xf32>
    %483 = arith.subf %482, %481 : vector<64x1xf32>
    %484 = math.exp %483 : vector<64x1xf32>
    %cst_58 = arith.constant 1.000000e+00 : f32
    %485 = vector.broadcast %cst_58 : f32 to vector<64x1xf32>
    %486 = arith.addf %485, %484 : vector<64x1xf32>
    %487 = math.log %486 : vector<64x1xf32>
    %488 = arith.addf %480, %487 : vector<64x1xf32>
    %cst_59 = arith.constant 0.000000e+00 : f32
    %489 = vector.broadcast %cst_59 : f32 to vector<64x1xf32>
    %490 = arith.subf %489, %488 : vector<64x1xf32>
    %cst_60 = arith.constant -1.000000e+02 : f32
    %491 = vector.broadcast %cst_60 : f32 to vector<64x1xf32>
    %492 = arith.maximumf %490, %491 : vector<64x1xf32>
    %cst_61 = arith.constant 0.000000e+00 : f32
    %493 = vector.broadcast %cst_61 : f32 to vector<64x1xf32>
    %494 = arith.maximumf %476, %493 : vector<64x1xf32>
    %495 = math.absf %476 : vector<64x1xf32>
    %cst_62 = arith.constant 0.000000e+00 : f32
    %496 = vector.broadcast %cst_62 : f32 to vector<64x1xf32>
    %497 = arith.subf %496, %495 : vector<64x1xf32>
    %498 = math.exp %497 : vector<64x1xf32>
    %cst_63 = arith.constant 1.000000e+00 : f32
    %499 = vector.broadcast %cst_63 : f32 to vector<64x1xf32>
    %500 = arith.addf %499, %498 : vector<64x1xf32>
    %501 = math.log %500 : vector<64x1xf32>
    %502 = arith.addf %494, %501 : vector<64x1xf32>
    %cst_64 = arith.constant 0.000000e+00 : f32
    %503 = vector.broadcast %cst_64 : f32 to vector<64x1xf32>
    %504 = arith.subf %503, %502 : vector<64x1xf32>
    %cst_65 = arith.constant -1.000000e+02 : f32
    %505 = vector.broadcast %cst_65 : f32 to vector<64x1xf32>
    %506 = arith.maximumf %504, %505 : vector<64x1xf32>
    %507 = arith.mulf %267, %492 : vector<64x1xf32>
    %cst_66 = arith.constant 1.000000e+00 : f32
    %508 = vector.broadcast %cst_66 : f32 to vector<64x1xf32>
    %509 = arith.subf %508, %267 : vector<64x1xf32>
    %510 = arith.mulf %509, %506 : vector<64x1xf32>
    %511 = arith.addf %507, %510 : vector<64x1xf32>
    %cst_67 = arith.constant 0.000000e+00 : f32
    %512 = vector.broadcast %cst_67 : f32 to vector<64x1xf32>
    %513 = arith.subf %512, %511 : vector<64x1xf32>
    %514 = vector.shape_cast %513 : vector<64x1xf32> to vector<1x64x1xf32>
    %cst_68 = arith.constant dense<0.000000e+00> : vector<1xf32>
    %515 = vector.multi_reduction <add>, %514, %cst_68 [1, 2] : vector<1x64x1xf32> to vector<1xf32>
    %516 = vector.shape_cast %515 : vector<1xf32> to vector<1x1x1xf32>
    %517 = vector.extract %516[0, 0, 0] : f32 from vector<1x1x1xf32>
    %518 = arith.addf %259, %517 : f32
    %cst_69 = arith.constant 1.280000e+02 : f32
    %519 = arith.divf %518, %cst_69 : f32
    %520 = vector.broadcast %519 : f32 to vector<1x1xf32>
    %c0_70 = arith.constant 0 : index
    %c0_71 = arith.constant 0 : index
    %521 = vector.load %arg3[%c0_70, %c0_71] : memref<1x1xf32, #tpu.memory_space<vmem>>, vector<1x1xf32>
    tpu.vector_store %arg3[%c0_70, %c0_71], %520 {strides = array<i32>} : memref<1x1xf32, #tpu.memory_space<vmem>>, vector<1x1xf32>,
    return
  }
  func.func @transform_0(%arg0: i32) -> (i32, i32, i32) {
    %c0_i32 = arith.constant 0 : i32
    %c0_i32_0 = arith.constant 0 : i32
    %c0_i32_1 = arith.constant 0 : i32
    %c0_i32_2 = arith.constant 0 : i32
    return %c0_i32, %c0_i32_0, %c0_i32_1 : i32, i32, i32
  }
  func.func @transform_1(%arg0: i32) -> (i32, i32) {
    %c0_i32 = arith.constant 0 : i32
    %c0_i32_0 = arith.constant 0 : i32
    %c0_i32_1 = arith.constant 0 : i32
    return %c0_i32, %c0_i32_0 : i32, i32
  }
  func.func @transform_2(%arg0: i32) -> (i32, i32) {
    %c0_i32 = arith.constant 0 : i32
    %c0_i32_0 = arith.constant 0 : i32
    %c0_i32_1 = arith.constant 0 : i32
    return %c0_i32, %c0_i32_0 : i32, i32
  }
}

</mosaic_0001>

<bundles_post_ra>
// kernel: tpu_custom_call.1
= control target key start
LH: loop header
LB: loop body
LE: loop exit
PB: predicated region body
PF: predicated region fallthrough
CT: control target
= control target key end

     0   :  { %vm47_vm0 = vcmask 1040384   ;;  %vm22_vm1 = vcmask 72704   ;;  %s3931_s0 = inlined_call_operand.vmem [shape: f32[2,64,9], index: 0, kind: input, shape index: {}]   ;;  %s3932_s1 = inlined_call_operand.vmem [shape: f32[9,1], index: 1, kind: input, shape index: {}]   ;;  %s3933_s2 = inlined_call_operand.hbm [shape: f32[1,1], index: 2, kind: output, shape index: {}]  }
   0x1   :  { %v14_v0 = vld [vmem:[%s3931_s0] sm:$0xff]  ;;  %v3025_v1 = vld [vmem:[%s3932_s1 + $0x8] sm:$0x1]  ;;  %v16_v4 = vld [vmem:[%s3931_s0 + $0x10] sm:$0xff] }
   0x2   :  { %v3030_v2 = vld [vmem:[%s3932_s1] sm:$0xff]  ;;  %204 = vxpose.xlu0.b32.start [1/8] (short) (narrow) %v14_v0, 16  ;;  %2481 = vmatprep.subr.msk.mxu0 %vm47_vm0, %v3025_v1  ;;  %v15_v3 = vld [vmem:[%s3931_s0 + $0x8] sm:$0xff]  ;;  %v21_v5 = vld [vmem:[%s3931_s0 + $0x38] sm:$0xff] }
   0x3   :  { %2482 = vmatpush3.msk.msra.mxu0 %vm47_vm0, %v3025_v1  ;;  %2485 = vmatprep.mubr.msk.f32.mxu0 %vm22_vm1, %v14_v0 }
   0x4   :  { %2483 = vmatprep.subr.mxu0 %v3030_v2 }
   0x5   :  { %7 = vsyncpa [#allocation3], 0  ;;  %2484 = vmatpush3.msra.mxu0 %v3030_v2  ;;  %2497 = vmatprep.subr.mxu1 %v21_v5  ;;  %v17_v6 = vld [vmem:[%s3931_s0 + $0x18] sm:$0xff]  ;;  %v20_v7 = vld [vmem:[%s3931_s0 + $0x30] sm:$0xff]  ;;  %vm236_vm2 = vcmask 523264   ;;  %v3939_v12 = vmov 0   ;;  %v393_v56 = vlaneseq }
   0x6   :  { %205 = vxpose.xlu0.b32.cont [2/8] (short) (narrow) %v15_v3, 16  ;;  %2486 = vmatmul.mubr.msk.f32.vlgmr.msra.gmra.mxu0 %vm22_vm1, %v15_v3  ;;  %v18_v8 = vld [vmem:[%s3931_s0 + $0x20] sm:$0xff]  ;;  %v19_v9 = vld [vmem:[%s3931_s0 + $0x28] sm:$0xff]  ;;  %v3946_v55 = vmov 1   ;;  %s2981_s28 = smov 127   ;;  %s2983_s29 = smov 1  }
   0x7   :  { %2488 = vmatprep.mubr.msk.f32.mxu0 %vm22_vm1, %v16_v4  ;;  %2498 = vmatpush3.msra.mxu1 %v21_v5  ;;  %v3118_v57 = vshrl.u32 %v393_v56, 7  ;;  %s2984_s30 = smov 126   ;;  %s2986_s3 = smov 2   ;;  %vm1151_vm12 = vcmask 7168   ;;  %vm2317_vm13 = vcmask 0  }
   0x8   :  { %2499 = vmatprep.subr.mxu1 %v20_v7  ;;  %2655 = vset.pattern.permute.xlu1 %v3939_v12  ;;  %s2987_s4 = smov 125   ;;  %s2988_s5 = smov 3  }
   0x9   :  { %2500 = vmatpush3.msra.mxu1 %v20_v7  ;;  %v3123_v60 = vsub.s32 0, %v3118_v57  ;;  %vm405_vm3 = vcmp.eq.s32.totalorder %v3118_v57, 0  ;;  %vm444_vm4 = vcmp.eq.s32.totalorder %v3118_v57, 1  ;;  %vm495_vm5 = vcmp.eq.s32.totalorder %v3118_v57, 2  ;;  %s2989_s6 = smov 124   ;;  %s2992_s7 = smov 4  }
   0xa   :  { %206 = vxpose.xlu0.b32.cont [3/8] (short) (narrow) %v16_v4, 16  ;;  %2489 = vmatmul.mubr.msk.f32.gmra.mxu0 %vm22_vm1, %v17_v6  ;;  %vm546_vm6 = vcmp.eq.s32.totalorder %v3118_v57, 3  ;;  %vm597_vm7 = vcmp.eq.s32.totalorder %v3118_v57, 4  ;;  %s2993_s8 = smov 123   ;;  %s2995_s9 = smov 5   ;;  %vm648_vm8 = vcmp.eq.s32.totalorder %v3118_v57, 5 }
   0xb   :  { %2491 = vmatprep.mubr.msk.f32.mxu0 %vm22_vm1, %v18_v8  ;;  %2501 = vmatprep.subr.mxu1 %v19_v9  ;;  %s2996_s10 = smov 122   ;;  %s2998_s11 = smov 6   ;;  %vm699_vm9 = vcmp.eq.s32.totalorder %v3118_v57, 6  ;;  %vm750_vm10 = vcmp.eq.s32.totalorder %v3118_v57, 7 }
   0xc   :  { %2502 = vmatpush3.msra.mxu1 %v19_v9  ;;  %s2999_s12 = smov 121   ;;  %s3000_s13 = smov 7  }
   0xd   :  { %2503 = vmatprep.subr.mxu1 %v18_v8  ;;  %s3001_s14 = smov 120   ;;  %s3002_s17 = smov 8  }
   0xe   :  { %207 = vxpose.xlu0.b32.cont [4/8] (short) (narrow) %v17_v6, 16  ;;  %2492 = vmatmul.mubr.msk.f32.gmra.mxu0 %vm22_vm1, %v19_v9 }
   0xf   :  { %2494 = vmatprep.mubr.msk.f32.mxu0 %vm22_vm1, %v20_v7  ;;  %2504 = vmatpush3.msra.mxu1 %v18_v8 }
  0x10   :  { %2505 = vmatprep.subr.mxu1 %v17_v6 }
  0x11   :  { %2506 = vmatpush3.msra.mxu1 %v17_v6 }
  0x12   :  { %208 = vxpose.xlu0.b32.cont [5/8] (short) (narrow) %v18_v8, 16  ;;  %2495 = vmatmul.mubr.msk.f32.gmra.mxu0 %vm22_vm1, %v21_v5 }
  0x13   :  { %2507 = vmatprep.subr.mxu1 %v16_v4 }
  0x14   :  { %2508 = vmatpush3.msra.mxu1 %v16_v4 }
  0x15   :  { %2509 = vmatprep.subr.mxu1 %v15_v3 }
  0x16   :  { %209 = vxpose.xlu0.b32.cont [6/8] (short) (narrow) %v19_v9, 16  ;;  %2510 = vmatpush3.msra.mxu1 %v15_v3 }
  0x17   :  { %2511 = vmatprep.subr.mxu1 %v14_v0 }
  0x18   :  { %2512 = vmatpush3.msra.mxu1 %v14_v0 }
  0x1a   :  { %210 = vxpose.xlu0.b32.cont [7/8] (short) (narrow) %v20_v7, 16 }
  0x1e   :  { %211 = vxpose.xlu0.b32.end [8/8] (short) (narrow) %v21_v5, 16 }
  0x7e   :  { %v220_v10 = vpop.trf.xlu0 }
  0x7f   :  { %2513 = vmatprep.mubr.msk.f32.mxu1 %vm236_vm2, %v220_v10  ;;  %2532 = vmatprep.mubr.msk.f32.mxu0 %vm236_vm2, %v220_v10 }
  0x82   :  { %v3069_v11 = vpop.trf.xlu0 }
  0x83   :  { %2514 = vmatmul.mubr.msk.f32.vlgmr.msra.gmra.mxu1 %vm236_vm2, %v3069_v11 }
  0x84   :  { %2539 = vmatprep.mubr.msk.f32.mxu1 %vm22_vm1, %v14_v0 }
  0xc6   :  { %v2487_v13 = vpop.f32.mrf.mxu0 }
  0xc7   :  { %v2343_v27 = vmul.f32 -1.442695, %v2487_v13 }
  0xc8   :  { %v117_v14 = vpop.f32.mrf.mxu0 }
  0xc9   :  { %v2342_v28 = vmul.f32 -1.442695, %v117_v14  ;;  %v3142_v14 = vsub.s32 1, %v3118_v57 }
  0xca   :  { %v2490_v15 = vpop.f32.mrf.mxu0 }
  0xcb   :  { %v2345_v21 = vmul.f32 -1.442695, %v2490_v15 }
  0xcc   :  { %v127_v16 = vpop.f32.mrf.mxu0 }
  0xcd   :  { %v2344_v25 = vmul.f32 -1.442695, %v127_v16 }
  0xce   :  { %v2493_v17 = vpop.f32.mrf.mxu0 }
  0xcf   :  { %v2347_v18 = vmul.f32 -1.442695, %v2493_v17 }
  0xd0   :  { %v137_v19 = vpop.f32.mrf.mxu0 }
  0xd1   :  { %v2346_v20 = vmul.f32 -1.442695, %v137_v19  ;;  %2684 = vpow2.f32 %v2347_v18 }
  0xd2   :  { %v2496_v22 = vpop.f32.mrf.mxu0 }
  0xd3   :  { %v2349_v23 = vmul.f32 -1.442695, %v2496_v22  ;;  %2686 = vpow2.f32 %v2346_v20 }
  0xd4   :  { %v147_v24 = vpop.f32.mrf.mxu0 }
  0xd5   :  { %2688 = vpow2.f32 %v2349_v23  ;;  %v2348_v26 = vmul.f32 -1.442695, %v147_v24 }
  0xd6   :  { %2690 = vpow2.f32 %v2345_v21 }
  0xd7   :  { %2692 = vpow2.f32 %v2348_v26 }
  0xd8   :  { %2694 = vpow2.f32 %v2344_v25 }
  0xd9   :  { %2696 = vpow2.f32 %v2343_v27 }
  0xda   :  { %2698 = vpow2.f32 %v2342_v28 }
  0xde   :  { %v2685_v29 = vpop.eup %2684 }
  0xdf   :  { %v185_v32 = vadd.f32 1.0, %v2685_v29  ;;  %v3940_v29 = vmov 3  }
  0xe0   :  { %v2687_v30 = vpop.eup %2686 }
  0xe1   :  { %v184_v36 = vadd.f32 1.0, %v2687_v30 }
  0xe2   :  { %v2689_v31 = vpop.eup %2688 }
  0xe3   :  { %v2691_v33 = vpop.eup %2690  ;;  %v187_v34 = vadd.f32 1.0, %v2689_v31 }
  0xe4   :  { %v2693_v35 = vpop.eup %2692  ;;  %v183_v39 = vadd.f32 1.0, %v2691_v33 }
  0xe5   :  { %2700 = vrcp.f32 %v187_v34  ;;  %v186_v37 = vadd.f32 1.0, %v2693_v35  ;;  %v2695_v38 = vpop.eup %2694 }
  0xe6   :  { %2702 = vrcp.f32 %v185_v32  ;;  %v2697_v40 = vpop.eup %2696  ;;  %v182_v41 = vadd.f32 1.0, %v2695_v38  ;;  %v3163_v32 = vsub.s32 2, %v3118_v57 }
  0xe7   :  { %2704 = vrcp.f32 %v186_v37  ;;  %v2699_v42 = vpop.eup %2698  ;;  %v181_v43 = vadd.f32 1.0, %v2697_v40 }
  0xe8   :  { %2706 = vrcp.f32 %v184_v36  ;;  %v180_v44 = vadd.f32 1.0, %v2699_v42 }
  0xe9   :  { %2708 = vrcp.f32 %v183_v39 }
  0xea   :  { %2710 = vrcp.f32 %v182_v41 }
  0xeb   :  { %2712 = vrcp.f32 %v181_v43 }
  0xec   :  { %2714 = vrcp.f32 %v180_v44 }
  0xf2   :  { %v3075_v45 = vpop.eup %2700 }
  0xf3   :  { %v3077_v46 = vpop.eup %2702  ;;  %2516 = vmatprep.subr.mxu0 %v3075_v45 }
  0xf4   :  { %v3080_v47 = vpop.eup %2704  ;;  %2517 = vmatpush3.msra.mxu0 %v3075_v45 }
  0xf5   :  { %2518 = vmatprep.subr.mxu0 %v3080_v47  ;;  %v3084_v48 = vpop.eup %2706 }
  0xf6   :  { %2519 = vmatpush3.msra.mxu0 %v3080_v47  ;;  %v3088_v49 = vpop.eup %2708 }
  0xf7   :  { %2520 = vmatprep.subr.mxu0 %v3077_v46  ;;  %v3092_v50 = vpop.eup %2710 }
  0xf8   :  { %2521 = vmatpush3.msra.mxu0 %v3077_v46  ;;  %v3096_v51 = vpop.eup %2712 }
  0xf9   :  { %2522 = vmatprep.subr.mxu0 %v3084_v48  ;;  %v3100_v52 = vpop.eup %2714 }
  0xfa   :  { %2523 = vmatpush3.msra.mxu0 %v3084_v48 }
  0xfb   :  { %2524 = vmatprep.subr.mxu0 %v3088_v49 }
  0xfc   :  { %2525 = vmatpush3.msra.mxu0 %v3088_v49 }
  0xfd   :  { %2526 = vmatprep.subr.mxu0 %v3092_v50 }
  0xfe   :  { %2527 = vmatpush3.msra.mxu0 %v3092_v50 }
  0xff   :  { %2528 = vmatprep.subr.mxu0 %v3096_v51 }
 0x100   :  { %2529 = vmatpush3.msra.mxu0 %v3096_v51 }
 0x101   :  { %2530 = vmatprep.subr.mxu0 %v3100_v52 }
 0x102   :  { %2531 = vmatpush3.msra.mxu0 %v3100_v52 }
 0x103   :  { %2533 = vmatmul.mubr.msk.f32.vlgmr.msra.gmra.mxu0 %vm236_vm2, %v3069_v11  ;;  %2551 = vmatprep.subr.msk.mxu0 %vm47_vm0, %v3025_v1  ;;  %v3942_v11 = vmov 2  }
 0x104   :  { %2552 = vmatpush3.msk.msra.mxu0 %vm47_vm0, %v3025_v1 }
 0x105   :  { %2553 = vmatprep.subr.mxu0 %v3030_v2 }
 0x106   :  { %2554 = vmatpush3.msra.mxu0 %v3030_v2 }
 0x143   :  { %v3115_v53 = vpop.f32.mrf.mxu1 }
 0x145   :  { %v309_v54 = vpop.f32.mrf.mxu1 }
 0x146   :  { %398 = vperm.xlu1 %2655, %v309_v54   ;;  %2716 = vrcp.f32 %v309_v54 }
 0x14a   :  { %2656 = vset.pattern.permute.xlu1 %v3946_v55 }
 0x153   :  { %v2717_v61 = vpop.eup %2716 }
 0x1c1   :  { %v399_v58 = vpop.permute.xlu1 %398 }
 0x1c2   :  { %2718 = vrcp.f32 %v399_v58 }
 0x1c3   :  { %v3120_v59 = vpop.f32.mrf.mxu0 }
 0x1c5   :  { %v384_v62 = vpop.f32.mrf.mxu0 }
 0x1c6   :  { %v404_v63 = vmul.f32 %v2717_v61, %v384_v62 }
 0x1c8   :  { %v425_v0 = vrot.slane %v404_v63, %v3123_v60 }
 0x1ca   :  { %v3127_v1 = vmul.f32 %v3115_v53, %v425_v0  ;;  %v426_v10 = vmul.f32 %v425_v0, %v309_v54 }
 0x1cc   :  { %v429_v2 = vsub.f32 %v3120_v59, %v3127_v1  ;;  %v428_v13 = vsub.f32 %v384_v62, %v426_v10  ;;  %v3184_v62 = vsub.s32 3, %v3118_v57 }
 0x1ce   :  { %v430_v17 = vsel %vm405_vm3, %v425_v0, %v428_v13 }
 0x1cf   :  { %v2719_v3 = vpop.eup %2718 }
 0x1d0   :  { %v402_v4 = vmul.f32 %v2719_v3, %v309_v54 }
 0x1d2   :  { %v3132_v5 = vrot.slane %v402_v4, %v3123_v60 }
 0x1d4   :  { %v416_v6 = vmul.f32 %v3132_v5, %v399_v58 }
 0x1d6   :  { %v418_v7 = vsub.f32 %v309_v54, %v416_v6 }
 0x1d8   :  { %v420_v8 = vsel %vm405_vm3, %v3132_v5, %v418_v7 }
 0x1d9   :  { %439 = vrot.lane.b32.xlu1 %v420_v8, %s2981_s28 }
 0x1dd   :  { %434 = vperm.xlu1 %2656, %v420_v8  }
 0x1e1   :  { %2657 = vset.pattern.permute.xlu1 %v3942_v11 }
 0x24b   :  { %v440_v9 = vpop.permute.xlu1 %439 }
 0x24c   :  { %2720 = vrcp.f32 %v440_v9 }
 0x258   :  { %v435_v15 = vpop.permute.xlu1 %434 }
 0x259   :  { %v2721_v16 = vpop.eup %2720  ;;  %2722 = vrcp.f32 %v435_v15 }
 0x25a   :  { %v443_v18 = vmul.f32 %v2721_v16, %v430_v17 }
 0x25c   :  { %v464_v19 = vrot.slane %v443_v18, %v3142_v14 }
 0x25e   :  { %466 = vrot.lane.b32.xlu1 %v464_v19, %s2983_s29 }
 0x266   :  { %v2723_v20 = vpop.eup %2722 }
 0x267   :  { %v438_v21 = vmul.f32 %v2723_v20, %v420_v8 }
 0x269   :  { %v3149_v22 = vrot.slane %v438_v21, %v3142_v14  ;;  %v3937_v21 = vmov 4  }
 0x26b   :  { %v455_v23 = vmul.f32 %v3149_v22, %v435_v15 }
 0x26d   :  { %v457_v24 = vsub.f32 %v420_v8, %v455_v23 }
 0x26f   :  { %v459_v25 = vsel %vm444_vm4, %v3149_v22, %v457_v24  ;;  %v2991_v24 = vmov 5  }
 0x270   :  { %490 = vrot.lane.b32.xlu1 %v459_v25, %s2984_s30  ;;  %2664 = vset.pattern.permute.xlu0 %v2991_v24 }
 0x2d0   :  { %v3157_v26 = vpop.permute.xlu1 %466 }
 0x2d1   :  { %v469_v27 = vmul.f32 %v3157_v26, %v420_v8 }
 0x2d3   :  { %473 = vrot.lane.b32.xlu1 %v469_v27, %s2981_s28 }
 0x2d7   :  { %485 = vperm.xlu1 %2657, %v459_v25  }
 0x2db   :  { %2658 = vset.pattern.permute.xlu1 %v3940_v29 }
 0x2e2   :  { %v491_v28 = vpop.permute.xlu1 %490 }
 0x2e3   :  { %2724 = vrcp.f32 %v491_v28 }
 0x2f0   :  { %v2725_v33 = vpop.eup %2724 }
 0x345   :  { %v474_v30 = vpop.permute.xlu1 %473 }
 0x346   :  { %v479_v31 = vsub.f32 %v430_v17, %v474_v30 }
 0x348   :  { %v481_v34 = vsel %vm444_vm4, %v464_v19, %v479_v31 }
 0x349   :  { %v494_v35 = vmul.f32 %v2725_v33, %v481_v34 }
 0x34b   :  { %v515_v36 = vrot.slane %v494_v35, %v3163_v32 }
 0x34d   :  { %517 = vrot.lane.b32.xlu1 %v515_v36, %s2986_s3 }
 0x352   :  { %v486_v37 = vpop.permute.xlu1 %485 }
 0x353   :  { %2726 = vrcp.f32 %v486_v37 }
 0x360   :  { %v2727_v38 = vpop.eup %2726 }
 0x361   :  { %v489_v39 = vmul.f32 %v2727_v38, %v459_v25 }
 0x363   :  { %v3170_v40 = vrot.slane %v489_v39, %v3163_v32 }
 0x365   :  { %v506_v41 = vmul.f32 %v3170_v40, %v486_v37 }
 0x367   :  { %v508_v42 = vsub.f32 %v459_v25, %v506_v41 }
 0x369   :  { %v510_v43 = vsel %vm495_vm5, %v3170_v40, %v508_v42 }
 0x36a   :  { %541 = vrot.lane.b32.xlu0 %v510_v43, %s2987_s4 }
 0x3bf   :  { %v3178_v44 = vpop.permute.xlu1 %517 }
 0x3c0   :  { %v520_v54 = vmul.f32 %v3178_v44, %v459_v25 }
 0x3c2   :  { %524 = vrot.lane.b32.xlu1 %v520_v54, %s2984_s30 }
 0x3c6   :  { %536 = vperm.xlu1 %2658, %v510_v43  }
 0x3ca   :  { %2659 = vset.pattern.permute.xlu1 %v3939_v12 }
 0x3dc   :  { %v542_v56 = vpop.permute.xlu0 %541 }
 0x3dd   :  { %2728 = vrcp.f32 %v542_v56  ;;  %v3936_v56 = vmov 6  }
 0x3ea   :  { %v2729_v63 = vpop.eup %2728 }
 0x434   :  { %v525_v58 = vpop.permute.xlu1 %524 }
 0x435   :  { %v530_v61 = vsub.f32 %v481_v34, %v525_v58 }
 0x437   :  { %v532_v0 = vsel %vm495_vm5, %v515_v36, %v530_v61 }
 0x438   :  { %v545_v3 = vmul.f32 %v2729_v63, %v532_v0 }
 0x43a   :  { %v566_v4 = vrot.slane %v545_v3, %v3184_v62 }
 0x43c   :  { %568 = vrot.lane.b32.xlu1 %v566_v4, %s2988_s5 }
 0x440   :  { %409 = vperm.xlu1 %2659, %v3115_v53  }
 0x441   :  { %v537_v6 = vpop.permute.xlu1 %536 }
 0x442   :  { %2730 = vrcp.f32 %v537_v6 }
 0x444   :  { %2660 = vset.pattern.permute.xlu1 %v3946_v55 }
 0x44f   :  { %v2731_v7 = vpop.eup %2730 }
 0x450   :  { %v540_v8 = vmul.f32 %v2731_v7, %v510_v43 }
 0x452   :  { %v3193_v9 = vrot.slane %v540_v8, %v3184_v62 }
 0x454   :  { %v557_v10 = vmul.f32 %v3193_v9, %v537_v6  ;;  %v3243_v6 = vsub.s32 5, %v3118_v57 }
 0x456   :  { %v559_v13 = vsub.f32 %v510_v43, %v557_v10 }
 0x458   :  { %v561_v15 = vsel %vm546_vm6, %v3193_v9, %v559_v13 }
 0x459   :  { %592 = vrot.lane.b32.xlu1 %v561_v15, %s2989_s6 }
 0x4ae   :  { %v3201_v16 = vpop.permute.xlu1 %568 }
 0x4af   :  { %v571_v17 = vmul.f32 %v3201_v16, %v510_v43 }
 0x4b1   :  { %575 = vrot.lane.b32.xlu1 %v571_v17, %s2987_s4 }
 0x4bb   :  { %v410_v18 = vpop.permute.xlu1 %409 }
 0x4bc   :  { %v417_v19 = vmul.f32 %v3132_v5, %v410_v18  ;;  %v3214_v5 = vsub.s32 4, %v3118_v57 }
 0x4be   :  { %v3207_v20 = vsub.f32 %v3115_v53, %v417_v19 }
 0x4c0   :  { %448 = vperm.xlu1 %2660, %v3207_v20  }
 0x4c4   :  { %2661 = vset.pattern.permute.xlu1 %v3937_v21 }
 0x4c5   :  { %587 = vperm.xlu1 %2661, %v561_v15  }
 0x4c9   :  { %2662 = vset.pattern.permute.xlu1 %v3942_v11 }
 0x4cb   :  { %v593_v23 = vpop.permute.xlu1 %592 }
 0x4cc   :  { %2732 = vrcp.f32 %v593_v23 }
 0x4d9   :  { %v2733_v53 = vpop.eup %2732 }
 0x523   :  { %v576_v25 = vpop.permute.xlu1 %575 }
 0x524   :  { %v581_v27 = vsub.f32 %v532_v0, %v576_v25 }
 0x526   :  { %v583_v28 = vsel %vm546_vm6, %v566_v4, %v581_v27 }
 0x527   :  { %v596_v30 = vmul.f32 %v2733_v53, %v583_v28 }
 0x529   :  { %v617_v31 = vrot.slane %v596_v30, %v3214_v5 }
 0x52b   :  { %619 = vrot.lane.b32.xlu1 %v617_v31, %s2992_s7 }
 0x53b   :  { %v449_v33 = vpop.permute.xlu1 %448 }
 0x53c   :  { %v456_v34 = vmul.f32 %v3149_v22, %v449_v33 }
 0x53e   :  { %v3222_v35 = vsub.f32 %v3207_v20, %v456_v34 }
 0x540   :  { %499 = vperm.xlu1 %2662, %v3222_v35   ;;  %v588_v36 = vpop.permute.xlu1 %587 }
 0x541   :  { %2734 = vrcp.f32 %v588_v36 }
 0x544   :  { %2663 = vset.pattern.permute.xlu1 %v3940_v29 }
 0x54e   :  { %v2735_v37 = vpop.eup %2734 }
 0x54f   :  { %v591_v38 = vmul.f32 %v2735_v37, %v561_v15 }
 0x551   :  { %v607_v39 = vrot.slane %v591_v38, %v3214_v5 }
 0x553   :  { %v608_v41 = vmul.f32 %v607_v39, %v588_v36 }
 0x555   :  { %v610_v42 = vsub.f32 %v561_v15, %v608_v41 }
 0x557   :  { %v612_v22 = vsel %vm597_vm7, %v607_v39, %v610_v42  ;;  %v3270_v42 = vsub.s32 6, %v3118_v57 }
 0x558   :  { %643 = vrot.lane.b32.xlu1 %v612_v22, %s2993_s8 }
 0x59d   :  { %v3231_v43 = vpop.permute.xlu1 %619 }
 0x59e   :  { %v622_v54 = vmul.f32 %v3231_v43, %v561_v15 }
 0x5a0   :  { %626 = vrot.lane.b32.xlu0 %v622_v54, %s2989_s6 }
 0x5a4   :  { %638 = vperm.xlu0 %2664, %v612_v22  }
 0x5a8   :  { %2666 = vset.pattern.permute.xlu0 %v3936_v56 }
 0x5bb   :  { %v500_v58 = vpop.permute.xlu1 %499 }
 0x5bc   :  { %v507_v61 = vmul.f32 %v3170_v40, %v500_v58 }
 0x5be   :  { %v3238_v63 = vsub.f32 %v3222_v35, %v507_v61 }
 0x5c0   :  { %550 = vperm.xlu1 %2663, %v3238_v63  }
 0x5c4   :  { %2665 = vset.pattern.permute.xlu1 %v3937_v21 }
 0x5ca   :  { %v644_v0 = vpop.permute.xlu1 %643 }
 0x5cb   :  { %2736 = vrcp.f32 %v644_v0 }
 0x5d8   :  { %v2737_v7 = vpop.eup %2736 }
 0x612   :  { %v627_v3 = vpop.permute.xlu0 %626 }
 0x613   :  { %v632_v4 = vsub.f32 %v583_v28, %v627_v3 }
 0x615   :  { %v634_v8 = vsel %vm597_vm7, %v617_v31, %v632_v4 }
 0x616   :  { %v647_v10 = vmul.f32 %v2737_v7, %v634_v8 }
 0x618   :  { %v668_v40 = vrot.slane %v647_v10, %v3243_v6 }
 0x61a   :  { %670 = vrot.lane.b32.xlu1 %v668_v40, %s2995_s9 }
 0x61f   :  { %v639_v13 = vpop.permute.xlu0 %638 }
 0x620   :  { %2738 = vrcp.f32 %v639_v13 }
 0x62d   :  { %v2739_v15 = vpop.eup %2738 }
 0x62e   :  { %v642_v17 = vmul.f32 %v2739_v15, %v612_v22 }
 0x630   :  { %v658_v18 = vrot.slane %v642_v17, %v3243_v6 }
 0x632   :  { %v659_v19 = vmul.f32 %v658_v18, %v639_v13 }
 0x634   :  { %v661_v23 = vsub.f32 %v612_v22, %v659_v19 }
 0x636   :  { %v663_v25 = vsel %vm648_vm8, %v658_v18, %v661_v23 }
 0x637   :  { %694 = vrot.lane.b32.xlu0 %v663_v25, %s2996_s10 }
 0x63b   :  { %689 = vperm.xlu0 %2666, %v663_v25   ;;  %v551_v27 = vpop.permute.xlu1 %550 }
 0x63c   :  { %v558_v53 = vmul.f32 %v3193_v9, %v551_v27  ;;  %v3934_v9 = vmov 7  }
 0x63e   :  { %v3256_v28 = vsub.f32 %v3238_v63, %v558_v53 }
 0x640   :  { %601 = vperm.xlu1 %2665, %v3256_v28  }
 0x644   :  { %2667 = vset.pattern.permute.xlu1 %v2991_v24 }
 0x68c   :  { %v3260_v30 = vpop.permute.xlu1 %670 }
 0x68d   :  { %v673_v31 = vmul.f32 %v3260_v30, %v612_v22 }
 0x68f   :  { %677 = vrot.lane.b32.xlu1 %v673_v31, %s2993_s8 }
 0x6a9   :  { %v695_v37 = vpop.permute.xlu0 %694 }
 0x6b6   :  { %v690_v38 = vpop.permute.xlu0 %689 }
 0x6b7   :  { %2740 = vrcp.f32 %v690_v38 }
 0x6b8   :  { %2742 = vrcp.f32 %v695_v37 }
 0x6bb   :  { %v602_v33 = vpop.permute.xlu1 %601 }
 0x6bc   :  { %v609_v34 = vmul.f32 %v607_v39, %v602_v33 }
 0x6be   :  { %v3265_v36 = vsub.f32 %v3256_v28, %v609_v34 }
 0x6c0   :  { %652 = vperm.xlu1 %2667, %v3265_v36  }
 0x6c4   :  { %2668 = vset.pattern.permute.xlu1 %v3934_v9  ;;  %v2741_v41 = vpop.eup %2740 }
 0x6c5   :  { %v693_v22 = vmul.f32 %v2741_v41, %v663_v25  ;;  %v2743_v61 = vpop.eup %2742 }
 0x6c7   :  { %v709_v54 = vrot.slane %v693_v22, %v3270_v42  ;;  %v470_v22 = vmul.f32 %v3157_v26, %v3207_v20 }
 0x6c9   :  { %v710_v0 = vmul.f32 %v709_v54, %v690_v38  ;;  %v3294_v38 = vsub.s32 7, %v3118_v57 }
 0x6cb   :  { %v712_v10 = vsub.f32 %v663_v25, %v710_v0 }
 0x6cd   :  { %v3280_v13 = vsel %vm699_vm9, %v709_v54, %v712_v10 }
 0x701   :  { %v678_v39 = vpop.permute.xlu1 %677 }
 0x702   :  { %v683_v58 = vsub.f32 %v634_v8, %v678_v39  ;;  %v623_v39 = vmul.f32 %v3231_v43, %v3256_v28  ;;  %v572_v43 = vmul.f32 %v3201_v16, %v3238_v63  ;;  %v674_v28 = vmul.f32 %v3260_v30, %v3265_v36  ;;  %v3340_v16 = vld [vmem:[%s3931_s0 + $0x50] sm:$0xff]  ;;  %v3351_v63 = vld [vmem:[%s3931_s0 + $0x58] sm:$0xff] }
 0x704   :  { %v685_v3 = vsel %vm648_vm8, %v668_v40, %v683_v58 }
 0x705   :  { %v698_v4 = vmul.f32 %v2743_v61, %v685_v3 }
 0x707   :  { %v719_v7 = vrot.slane %v698_v4, %v3270_v42  ;;  %v3330_v4 = vld [vmem:[%s3931_s0 + $0x40] sm:$0xff] }
 0x708   :  { %2555 = vmatprep.mubr.msk.f32.mxu0 %vm22_vm1, %v3330_v4 }
 0x709   :  { %721 = vrot.lane.b32.xlu1 %v719_v7, %s2998_s11 }
 0x70d   :  { %745 = vrot.lane.b32.xlu1 %v3280_v13, %s2999_s12 }
 0x711   :  { %740 = vperm.xlu1 %2668, %v3280_v13  }
 0x73b   :  { %v653_v8 = vpop.permute.xlu1 %652 }
 0x73c   :  { %v660_v40 = vmul.f32 %v658_v18, %v653_v8  ;;  %v3366_v8 = vld [vmem:[%s3931_s0 + $0x68] sm:$0xff] }
 0x73e   :  { %v662_v15 = vsub.f32 %v3265_v36, %v660_v40  ;;  %v3356_v36 = vld [vmem:[%s3931_s0 + $0x60] sm:$0xff]  ;;  %v3371_v40 = vld [vmem:[%s3931_s0 + $0x70] sm:$0xff] }
 0x740   :  { %703 = vperm.xlu0 %2666, %v662_v15  }
 0x744   :  { %2669 = vset.pattern.permute.xlu0 %v3934_v9 }
 0x77b   :  { %v722_v17 = vpop.permute.xlu1 %721 }
 0x77c   :  { %v724_v19 = vmul.f32 %v722_v17, %v663_v25  ;;  %v725_v58 = vmul.f32 %v722_v17, %v662_v15  ;;  %v3382_v17 = vld [vmem:[%s3931_s0 + $0x78] sm:$0xff] }
 0x77e   :  { %728 = vrot.lane.b32.xlu0 %v724_v19, %s2996_s10 }
 0x77f   :  { %v746_v31 = vpop.permute.xlu1 %745 }
 0x780   :  { %2744 = vrcp.f32 %v746_v31 }
 0x78c   :  { %v741_v61 = vpop.permute.xlu1 %740 }
 0x78d   :  { %v2745_v18 = vpop.eup %2744  ;;  %2746 = vrcp.f32 %v741_v61 }
 0x79a   :  { %v2747_v0 = vpop.eup %2746 }
 0x79b   :  { %v744_v26 = vmul.f32 %v2747_v0, %v3280_v13 }
 0x79d   :  { %v3314_v20 = vrot.slane %v744_v26, %v3294_v38 }
 0x7bb   :  { %v704_v23 = vpop.permute.xlu0 %703 }
 0x7bc   :  { %v711_v27 = vmul.f32 %v709_v54, %v704_v23  ;;  %v521_v54 = vmul.f32 %v3178_v44, %v3222_v35 }
 0x7be   :  { %v713_v53 = vsub.f32 %v662_v15, %v711_v27 }
 0x7c0   :  { %754 = vperm.xlu0 %2669, %v713_v53  }
 0x7c4   :  { %2670 = vset.pattern.permute.xlu0 %v3939_v12 }
 0x7f0   :  { %v729_v33 = vpop.permute.xlu0 %728 }
 0x7f1   :  { %v734_v34 = vsub.f32 %v685_v3, %v729_v33 }
 0x7f3   :  { %v3291_v37 = vsel %vm699_vm9, %v719_v7, %v734_v34  ;;  %v3335_v7 = vld [vmem:[%s3931_s0 + $0x48] sm:$0xff] }
 0x7f4   :  { %v749_v25 = vmul.f32 %v2745_v18, %v3291_v37  ;;  %2556 = vmatmul.mubr.msk.f32.vlgmr.msra.gmra.mxu0 %vm22_vm1, %v3335_v7 }
 0x7f5   :  { %2558 = vmatprep.mubr.msk.f32.mxu0 %vm22_vm1, %v3340_v16 }
 0x7f6   :  { %v3298_v41 = vrot.slane %v749_v25, %v3294_v38 }
 0x7f8   :  { %772 = vrot.lane.b32.xlu1 %v3298_v41, %s3000_s13  ;;  %2559 = vmatmul.mubr.msk.f32.gmra.mxu0 %vm22_vm1, %v3351_v63 }
 0x7f9   :  { %2561 = vmatprep.mubr.msk.f32.mxu0 %vm22_vm1, %v3356_v36 }
 0x7fc   :  { %475 = vrot.lane.b32.xlu1 %v470_v22, %s2981_s28  ;;  %2562 = vmatmul.mubr.msk.f32.gmra.mxu0 %vm22_vm1, %v3366_v8 }
 0x7fd   :  { %2564 = vmatprep.mubr.msk.f32.mxu0 %vm22_vm1, %v3371_v40 }
 0x800   :  { %526 = vrot.lane.b32.xlu1 %v521_v54, %s2984_s30  ;;  %2565 = vmatmul.mubr.msk.f32.gmra.mxu0 %vm22_vm1, %v3382_v17 }
 0x804   :  { %628 = vrot.lane.b32.xlu1 %v623_v39, %s2989_s6 }
 0x808   :  { %730 = vrot.lane.b32.xlu1 %v725_v58, %s2996_s10 }
 0x83b   :  { %v755_v3 = vpop.permute.xlu0 %754 }
 0x83c   :  { %v762_v44 = vmul.f32 %v3314_v20, %v755_v3 }
 0x83e   :  { %v3317_v35 = vsub.f32 %v713_v53, %v762_v44 }
 0x840   :  { %790 = vrot.lane.b32.xlu0 %v3317_v35, %s3001_s14 }
 0x844   :  { %577 = vrot.lane.b32.xlu0 %v572_v43, %s2987_s4 }
 0x848   :  { %679 = vrot.lane.b32.xlu0 %v674_v28, %s2993_s8 }
 0x86a   :  { %v773_v30 = vpop.permute.xlu1 %772 }
 0x86b   :  { %v776_v10 = vmul.f32 %v773_v30, %v713_v53  ;;  %v775_v15 = vmul.f32 %v773_v30, %v3280_v13  ;;  %v761_v30 = vmul.f32 %v3314_v20, %v741_v61 }
 0x86d   :  { %781 = vrot.lane.b32.xlu0 %v776_v10, %s2999_s12 }
 0x86e   :  { %v476_v19 = vpop.permute.xlu1 %475 }
 0x86f   :  { %v480_v53 = vsub.f32 %v429_v2, %v476_v19 }
 0x871   :  { %779 = vrot.lane.b32.xlu0 %v775_v15, %s2999_s12 }
 0x872   :  { %v527_v27 = vpop.permute.xlu1 %526 }
 0x873   :  { %v531_v33 = vsub.f32 %v480_v53, %v527_v27  ;;  %v763_v27 = vsub.f32 %v3280_v13, %v761_v30 }
 0x875   :  { %v765_v61 = vsel %vm750_vm10, %v3314_v20, %v763_v27 }
 0x876   :  { %v629_v18 = vpop.permute.xlu1 %628 }
 0x87a   :  { %v731_v39 = vpop.permute.xlu1 %730 }
 0x8b2   :  { %v791_v23 = vpop.permute.xlu0 %790 }
 0x8b3   :  { %2748 = vrcp.f32 %v791_v23 }
 0x8b4   :  { %v2557_v59 = vpop.f32.mrf.mxu0 }
 0x8b6   :  { %v578_v31 = vpop.permute.xlu0 %577  ;;  %v1276_v1 = vpop.f32.mrf.mxu0 }
 0x8b7   :  { %v582_v34 = vsub.f32 %v531_v33, %v578_v31 }
 0x8b8   :  { %v2560_v2 = vpop.f32.mrf.mxu0 }
 0x8b9   :  { %v633_v25 = vsub.f32 %v582_v34, %v629_v18  ;;  %v2383_v53 = vmul.f32 -1.442695, %v2560_v2 }
 0x8ba   :  { %v680_v22 = vpop.permute.xlu0 %679  ;;  %v1286_v28 = vpop.f32.mrf.mxu0 }
 0x8bb   :  { %v684_v54 = vsub.f32 %v633_v25, %v680_v22  ;;  %v2382_v18 = vmul.f32 -1.442695, %v1286_v28 }
 0x8bc   :  { %v2563_v10 = vpop.f32.mrf.mxu0 }
 0x8bd   :  { %v735_v58 = vsub.f32 %v684_v54, %v731_v39  ;;  %v2385_v15 = vmul.f32 -1.442695, %v2563_v10  ;;  %v2381_v39 = vmul.f32 -1.442695, %v2557_v59 }
 0x8be   :  { %v1296_v19 = vpop.f32.mrf.mxu0 }
 0x8bf   :  { %v2384_v23 = vmul.f32 -1.442695, %v1296_v19  ;;  %2750 = vpow2.f32 %v2385_v15 }
 0x8c0   :  { %v2749_v3 = vpop.eup %2748  ;;  %v2566_v31 = vpop.f32.mrf.mxu0 }
 0x8c1   :  { %v2387_v33 = vmul.f32 -1.442695, %v2566_v31  ;;  %2752 = vpow2.f32 %v2384_v23 }
 0x8c2   :  { %v1306_v34 = vpop.f32.mrf.mxu0 }
 0x8c3   :  { %2754 = vpow2.f32 %v2387_v33  ;;  %v2386_v25 = vmul.f32 -1.442695, %v1306_v34 }
 0x8c4   :  { %2756 = vpow2.f32 %v2383_v53 }
 0x8c5   :  { %2758 = vpow2.f32 %v2386_v25 }
 0x8c6   :  { %2760 = vpow2.f32 %v2382_v18 }
 0x8c7   :  { %2762 = vpow2.f32 %v2381_v39  ;;  %v3448_v39 = vadd.s32 8, %v3118_v57  ;;  %v2951_v57 = vld [vmem:[%s3931_s0 + $0x48] sm:$0xff] }
 0x8c9   :  { %vm796_vm11 = vcmp.eq.s32.totalorder %v3448_v39, 8  ;;  %v2952_v39 = vld [vmem:[%s3931_s0 + $0x58] sm:$0xff] }
 0x8df   :  { %v782_v0 = vpop.permute.xlu0 %781 }
 0x8e0   :  { %v3389_v26 = vsub.f32 %v735_v58, %v782_v0  ;;  %v2380_v58 = vmul.f32 -1.442695, %v1276_v1  ;;  %v2751_v0 = vpop.eup %2750 }
 0x8e1   :  { %v1344_v2 = vadd.f32 1.0, %v2751_v0 }
 0x8e2   :  { %v794_v44 = vmul.f32 %v2749_v3, %v3389_v26  ;;  %2764 = vpow2.f32 %v2380_v58  ;;  %v2753_v3 = vpop.eup %2752 }
 0x8e3   :  { %v1343_v10 = vadd.f32 1.0, %v2753_v3 }
 0x8e4   :  { %v3393_v43 = vrot.slane %v794_v44, %v3123_v60  ;;  %v2755_v44 = vpop.eup %2754 }
 0x8e5   :  { %v2757_v20 = vpop.eup %2756  ;;  %v1346_v28 = vadd.f32 1.0, %v2755_v44 }
 0x8e6   :  { %802 = vrot.lane.b32.xlu1 %v3393_v43, %s3002_s17  ;;  %v2759_v30 = vpop.eup %2758  ;;  %v1342_v15 = vadd.f32 1.0, %v2757_v20 }
 0x8e7   :  { %2766 = vrcp.f32 %v1346_v28  ;;  %v2761_v59 = vpop.eup %2760 }
 0x8e8   :  { %2768 = vrcp.f32 %v1344_v2  ;;  %v2763_v19 = vpop.eup %2762  ;;  %v1341_v23 = vadd.f32 1.0, %v2761_v59 }
 0x8e9   :  { %v1340_v27 = vadd.f32 1.0, %v2763_v19 }
 0x8ef   :  { %v2765_v1 = vpop.eup %2764 }
 0x8f0   :  { %v1339_v53 = vadd.f32 1.0, %v2765_v1 }
 0x8f4   :  { %v3406_v31 = vpop.eup %2766 }
 0x8f5   :  { %v3408_v33 = vpop.eup %2768  ;;  %2586 = vmatprep.subr.mxu0 %v3406_v31 }
 0x8f6   :  { %2587 = vmatpush3.msra.mxu0 %v3406_v31 }
 0x958   :  { %v803_v22 = vpop.permute.xlu1 %802 }
 0x959   :  { %v805_v54 = vmul.f32 %v803_v22, %v765_v61  ;;  %v806_v13 = vmul.f32 %v803_v22, %v3317_v35  ;;  %v1345_v35 = vadd.f32 1.0, %v2759_v30 }
 0x95b   :  { %811 = vrot.lane.b32.xlu1 %v806_v13, %s3001_s14  ;;  %809 = vrot.lane.b32.xlu0 %v805_v54, %s3001_s14  ;;  %2770 = vrcp.f32 %v1345_v35  ;;  %v780_v13 = vpop.permute.xlu0 %779 }
 0x95c   :  { %2772 = vrcp.f32 %v1343_v10  ;;  %v785_v58 = vsub.f32 %v3291_v37, %v780_v13  ;;  %v2944_v37 = vld [vmem:[%s3931_s0 + $0x8] sm:$0xff] }
 0x95d   :  { %2774 = vrcp.f32 %v1342_v15 }
 0x95e   :  { %2776 = vrcp.f32 %v1341_v23  ;;  %v787_v2 = vsel %vm750_vm10, %v3298_v41, %v785_v58  ;;  %v2945_v41 = vld [vmem:[%s3931_s0 + $0x10] sm:$0xff] }
 0x95f   :  { %2778 = vrcp.f32 %v1340_v27 }
 0x960   :  { %2780 = vrcp.f32 %v1339_v53 }
 0x968   :  { %v3411_v34 = vpop.eup %2770 }
 0x969   :  { %2588 = vmatprep.subr.mxu0 %v3411_v34  ;;  %v3415_v18 = vpop.eup %2772 }
 0x96a   :  { %2589 = vmatpush3.msra.mxu0 %v3411_v34  ;;  %v3419_v25 = vpop.eup %2774 }
 0x96b   :  { %2590 = vmatprep.subr.mxu0 %v3408_v33  ;;  %v3423_v61 = vpop.eup %2776 }
 0x96c   :  { %2591 = vmatpush3.msra.mxu0 %v3408_v33  ;;  %v3427_v22 = vpop.eup %2778 }
 0x96d   :  { %2592 = vmatprep.subr.mxu0 %v3415_v18  ;;  %v3431_v54 = vpop.eup %2780 }
 0x96e   :  { %2593 = vmatpush3.msra.mxu0 %v3415_v18 }
 0x96f   :  { %2594 = vmatprep.subr.mxu0 %v3419_v25 }
 0x970   :  { %2595 = vmatpush3.msra.mxu0 %v3419_v25 }
 0x971   :  { %2596 = vmatprep.subr.mxu0 %v3423_v61 }
 0x972   :  { %2597 = vmatpush3.msra.mxu0 %v3423_v61 }
 0x973   :  { %2598 = vmatprep.subr.mxu0 %v3427_v22 }
 0x974   :  { %2599 = vmatpush3.msra.mxu0 %v3427_v22 }
 0x975   :  { %2600 = vmatprep.subr.mxu0 %v3431_v54 }
 0x976   :  { %2601 = vmatpush3.msra.mxu0 %v3431_v54 }
 0x984   :  { %1363 = vxpose.xlu1.b32.start [1/8] (short) (narrow) %v3330_v4, 16 }
 0x988   :  { %1364 = vxpose.xlu1.b32.cont [2/8] (short) (narrow) %v3335_v7, 16 }
 0x98c   :  { %1365 = vxpose.xlu1.b32.cont [3/8] (short) (narrow) %v3340_v16, 16 }
 0x990   :  { %1366 = vxpose.xlu1.b32.cont [4/8] (short) (narrow) %v3351_v63, 16 }
 0x994   :  { %1367 = vxpose.xlu1.b32.cont [5/8] (short) (narrow) %v3356_v36, 16 }
 0x998   :  { %1368 = vxpose.xlu1.b32.cont [6/8] (short) (narrow) %v3366_v8, 16 }
 0x99c   :  { %1369 = vxpose.xlu1.b32.cont [7/8] (short) (narrow) %v3371_v40, 16 }
 0x9a0   :  { %1370 = vxpose.xlu1.b32.end [8/8] (short) (narrow) %v3382_v17, 16 }
 0x9be   :  { %2679 = vset.pattern.permute.xlu1 %v2991_v24 }
 0x9cd   :  { %v812_v0 = vpop.permute.xlu1 %811  ;;  %v810_v44 = vpop.permute.xlu0 %809 }
 0x9ce   :  { %v816_v3 = vsub.f32 %v3389_v26, %v812_v0  ;;  %v815_v20 = vsub.f32 %v787_v2, %v810_v44  ;;  %v2946_v26 = vld [vmem:[%s3931_s0 + $0x18] sm:$0xff] }
 0x9d0   :  { %v818_v24 = vsel %vm796_vm11, %v3393_v43, %v816_v3  ;;  %v2947_v43 = vld [vmem:[%s3931_s0 + $0x20] sm:$0xff] }
 0x9d1   :  { %2535 = vmatprep.subr.msk.mxu1 %vm47_vm0, %v818_v24 }
 0x9d2   :  { %2536 = vmatpush3.msk.msra.mxu1 %vm47_vm0, %v818_v24 }
 0x9d3   :  { %2537 = vmatprep.subr.mxu1 %v815_v20 }
 0x9d4   :  { %2538 = vmatpush3.msra.mxu1 %v815_v20 }
 0x9d5   :  { %2540 = vmatmul.mubr.msk.f32.vlgmr.msra.gmra.mxu1 %vm22_vm1, %v2944_v37  ;;  %2567 = vmatprep.subr.mxu1 %v3382_v17 }
 0x9d6   :  { %2542 = vmatprep.mubr.msk.f32.mxu1 %vm22_vm1, %v2945_v41  ;;  %2568 = vmatpush3.msra.mxu1 %v3382_v17  ;;  %v2949_v17 = vld [vmem:[%s3931_s0 + $0x30] sm:$0xff] }
 0x9d7   :  { %2569 = vmatprep.subr.mxu1 %v3371_v40 }
 0x9d8   :  { %2570 = vmatpush3.msra.mxu1 %v3371_v40  ;;  %v2948_v40 = vld [vmem:[%s3931_s0 + $0x28] sm:$0xff] }
 0x9d9   :  { %2543 = vmatmul.mubr.msk.f32.gmra.mxu1 %vm22_vm1, %v2946_v26  ;;  %2571 = vmatprep.subr.mxu1 %v3366_v8 }
 0x9da   :  { %2545 = vmatprep.mubr.msk.f32.mxu1 %vm22_vm1, %v2947_v43  ;;  %2572 = vmatpush3.msra.mxu1 %v3366_v8 }
 0x9db   :  { %2573 = vmatprep.subr.mxu1 %v3356_v36 }
 0x9dc   :  { %2574 = vmatpush3.msra.mxu1 %v3356_v36  ;;  %v2950_v36 = vld [vmem:[%s3931_s0 + $0x38] sm:$0xff] }
 0x9dd   :  { %2546 = vmatmul.mubr.msk.f32.gmra.mxu1 %vm22_vm1, %v2948_v40  ;;  %2575 = vmatprep.subr.mxu1 %v3351_v63 }
 0x9de   :  { %2548 = vmatprep.mubr.msk.f32.mxu1 %vm22_vm1, %v2949_v17  ;;  %2576 = vmatpush3.msra.mxu1 %v3351_v63 }
 0x9df   :  { %2577 = vmatprep.subr.mxu1 %v3340_v16 }
 0x9e0   :  { %2578 = vmatpush3.msra.mxu1 %v3340_v16 }
 0x9e1   :  { %2549 = vmatmul.mubr.msk.f32.gmra.mxu1 %vm22_vm1, %v2950_v36  ;;  %2579 = vmatprep.subr.mxu1 %v3335_v7 }
 0x9e2   :  { %2580 = vmatpush3.msra.mxu1 %v3335_v7 }
 0x9e3   :  { %2581 = vmatprep.subr.mxu1 %v3330_v4 }
 0x9e4   :  { %2582 = vmatpush3.msra.mxu1 %v3330_v4 }
 0xa00   :  { %v1379_v8 = vpop.trf.xlu1 }
 0xa01   :  { %2583 = vmatprep.mubr.msk.f32.mxu1 %vm236_vm2, %v1379_v8  ;;  %2602 = vmatprep.mubr.msk.f32.mxu0 %vm236_vm2, %v1379_v8 }
 0xa04   :  { %v1380_v63 = vpop.trf.xlu1 }
 0xa05   :  { %2584 = vmatmul.mubr.msk.f32.vlgmr.msra.gmra.mxu1 %vm236_vm2, %v1380_v63  ;;  %2603 = vmatmul.mubr.msk.f32.vlgmr.msra.gmra.mxu0 %vm236_vm2, %v1380_v63 }
 0xa06   :  { %2609 = vmatprep.mubr.msk.f32.mxu0 %vm22_vm1, %v3330_v4  ;;  %2612 = vmatprep.mubr.msk.f32.mxu1 %vm22_vm1, %v3340_v16 }
 0xa95   :  { %v3513_v7 = vpop.f32.mrf.mxu1 }
 0xa96   :  { %v928_v28 = vsub.f32 0.0, %v3513_v7  ;;  %v1032_v30 = vand.u32 2147483647, %v3513_v7 }
 0xa97   :  { %v3517_v10 = vpop.f32.mrf.mxu1 }
 0xa98   :  { %v944_v35 = vand.u32 2147483647, %v928_v28  ;;  %v1040_v59 = vsub.f32 0.0, %v1032_v30  ;;  %v927_v15 = vsub.f32 0.0, %v3517_v10  ;;  %v1031_v19 = vand.u32 2147483647, %v3517_v10 }
 0xa99   :  { %v3523_v4 = vpop.f32.mrf.mxu1 }
 0xa9a   :  { %v952_v23 = vsub.f32 0.0, %v944_v35  ;;  %v1049_v16 = vmul.f32 1.442695, %v1040_v59  ;;  %v943_v1 = vand.u32 2147483647, %v927_v15  ;;  %v1039_v27 = vsub.f32 0.0, %v1031_v19 }
 0xa9b   :  { %v930_v53 = vsub.f32 0.0, %v3523_v4  ;;  %v1034_v13 = vand.u32 2147483647, %v3523_v4  ;;  %v3529_v58 = vpop.f32.mrf.mxu1 }
 0xa9c   :  { %v961_v0 = vmul.f32 1.442695, %v952_v23  ;;  %2782 = vpow2.f32 %v1049_v16  ;;  %v951_v3 = vsub.f32 0.0, %v943_v1  ;;  %v929_v44 = vsub.f32 0.0, %v3529_v58 }
 0xa9d   :  { %v1047_v2 = vmul.f32 1.442695, %v1039_v27  ;;  %v946_v24 = vand.u32 2147483647, %v930_v53  ;;  %v1042_v20 = vsub.f32 0.0, %v1034_v13  ;;  %v3534_v37 = vpop.f32.mrf.mxu1 }
 0xa9e   :  { %2784 = vpow2.f32 %v961_v0  ;;  %v959_v41 = vmul.f32 1.442695, %v951_v3  ;;  %v945_v26 = vand.u32 2147483647, %v929_v44  ;;  %v1033_v8 = vand.u32 2147483647, %v3529_v58 }
 0xa9f   :  { %2786 = vpow2.f32 %v1047_v2  ;;  %v954_v43 = vsub.f32 0.0, %v946_v24  ;;  %v1053_v40 = vmul.f32 1.442695, %v1042_v20  ;;  %v3538_v17 = vpop.f32.mrf.mxu1  ;;  %v932_v63 = vsub.f32 0.0, %v3534_v37 }
 0xaa0   :  { %2788 = vpow2.f32 %v959_v41  ;;  %v953_v36 = vsub.f32 0.0, %v945_v26  ;;  %v1036_v35 = vand.u32 2147483647, %v3534_v37  ;;  %v1041_v19 = vsub.f32 0.0, %v1033_v8 }
 0xaa1   :  { %v965_v30 = vmul.f32 1.442695, %v954_v43  ;;  %2790 = vpow2.f32 %v1053_v40  ;;  %v948_v23 = vand.u32 2147483647, %v932_v63  ;;  %v3545_v16 = vpop.f32.mrf.mxu1  ;;  %v931_v27 = vsub.f32 0.0, %v3538_v17 }
 0xaa2   :  { %v963_v59 = vmul.f32 1.442695, %v953_v36  ;;  %v1044_v1 = vsub.f32 0.0, %v1036_v35  ;;  %v1051_v13 = vmul.f32 1.442695, %v1041_v19  ;;  %v3945_v20 = vsub.f32 0.0, %v3545_v16 }
 0xaa3   :  { %2792 = vpow2.f32 %v965_v30  ;;  %v956_v0 = vsub.f32 0.0, %v948_v23  ;;  %v1035_v3 = vand.u32 2147483647, %v3538_v17  ;;  %v947_v24 = vand.u32 2147483647, %v931_v27 }
 0xaa4   :  { %2794 = vpow2.f32 %v963_v59  ;;  %v1057_v2 = vmul.f32 1.442695, %v1044_v1  ;;  %v950_v40 = vand.u32 2147483647, %v3945_v20  ;;  %v1038_v8 = vand.u32 2147483647, %v3545_v16 }
 0xaa5   :  { %2796 = vpow2.f32 %v1051_v13  ;;  %v969_v41 = vmul.f32 1.442695, %v956_v0  ;;  %v1043_v26 = vsub.f32 0.0, %v1035_v3  ;;  %v955_v43 = vsub.f32 0.0, %v947_v24  ;;  %v3555_v0 = vpop.f32.mrf.mxu1 }
 0xaa6   :  { %2798 = vpow2.f32 %v1057_v2  ;;  %v958_v59 = vsub.f32 0.0, %v950_v40  ;;  %v1046_v23 = vsub.f32 0.0, %v1038_v8 }
 0xaa7   :  { %2800 = vpow2.f32 %v969_v41  ;;  %v1055_v36 = vmul.f32 1.442695, %v1043_v26  ;;  %v967_v35 = vmul.f32 1.442695, %v955_v43  ;;  %v3944_v43 = vsub.f32 0.0, %v3555_v0 }
 0xaa8   :  { %v973_v13 = vmul.f32 1.442695, %v958_v59  ;;  %v1061_v56 = vmul.f32 1.442695, %v1046_v23 }
 0xaa9   :  { %v2783_v30 = vpop.eup %2782  ;;  %2802 = vpow2.f32 %v1055_v36  ;;  %v949_v59 = vand.u32 2147483647, %v3944_v43 }
 0xaaa   :  { %v1064_v19 = vadd.f32 1.0, %v2783_v30  ;;  %2804 = vpow2.f32 %v967_v35 }
 0xaab   :  { %v2785_v1 = vpop.eup %2784 }
 0xaac   :  { %v2787_v3 = vpop.eup %2786  ;;  %v976_v2 = vadd.f32 1.0, %v2785_v1  ;;  %2806 = vlog2.f32 %v1064_v19  ;;  %v1037_v1 = vand.u32 2147483647, %v3555_v0 }
 0xaad   :  { %v2789_v24 = vpop.eup %2788  ;;  %v1063_v9 = vadd.f32 1.0, %v2787_v3  ;;  %2808 = vpow2.f32 %v973_v13 }
 0xaae   :  { %v2791_v41 = vpop.eup %2790  ;;  %2810 = vlog2.f32 %v976_v2  ;;  %v975_v26 = vadd.f32 1.0, %v2789_v24  ;;  %v957_v24 = vsub.f32 0.0, %v949_v59 }
 0xaaf   :  { %2812 = vlog2.f32 %v1063_v9  ;;  %v1066_v40 = vadd.f32 1.0, %v2791_v41 }
 0xab0   :  { %v2793_v36 = vpop.eup %2792  ;;  %2814 = vlog2.f32 %v975_v26  ;;  %v1120_v26 = vsub.f32 1.0, %v3096_v51  ;;  %v971_v12 = vmul.f32 1.442695, %v957_v24  ;;  %v1028_v24 = vmax.f32 %v3534_v37, 0.0 }
 0xab1   :  { %v2795_v8 = vpop.eup %2794  ;;  %v978_v30 = vadd.f32 1.0, %v2793_v36  ;;  %2816 = vlog2.f32 %v1066_v40 }
 0xab2   :  { %v977_v35 = vadd.f32 1.0, %v2795_v8  ;;  %2818 = vpow2.f32 %v1061_v56  ;;  %v2797_v19 = vpop.eup %2796  ;;  %v1045_v56 = vsub.f32 0.0, %v1037_v1  ;;  %v935_v1 = vmax.f32 %v927_v15, 0.0 }
 0xab3   :  { %2820 = vlog2.f32 %v978_v30  ;;  %v2799_v13 = vpop.eup %2798  ;;  %v1065_v23 = vadd.f32 1.0, %v2797_v19  ;;  %v1024_v19 = vmax.f32 %v3513_v7, 0.0 }
 0xab4   :  { %2822 = vlog2.f32 %v977_v35  ;;  %v2801_v3 = vpop.eup %2800  ;;  %v1068_v9 = vadd.f32 1.0, %v2799_v13  ;;  %v936_v35 = vmax.f32 %v928_v28, 0.0  ;;  %v1059_v28 = vmul.f32 1.442695, %v1045_v56 }
 0xab5   :  { %2824 = vlog2.f32 %v1065_v23  ;;  %v980_v2 = vadd.f32 1.0, %v2801_v3 }
 0xab6   :  { %v2803_v41 = vpop.eup %2802  ;;  %2826 = vlog2.f32 %v1068_v9  ;;  %v1023_v9 = vmax.f32 %v3517_v10, 0.0  ;;  %v1025_v10 = vmax.f32 %v3529_v58, 0.0  ;;  %v939_v58 = vmax.f32 %v931_v27, 0.0 }
 0xab7   :  { %v2805_v40 = vpop.eup %2804  ;;  %2828 = vlog2.f32 %v980_v2  ;;  %v1067_v30 = vadd.f32 1.0, %v2803_v41  ;;  %v938_v2 = vmax.f32 %v930_v53, 0.0  ;;  %v1026_v41 = vmax.f32 %v3523_v4, 0.0 }
 0xab8   :  { %v979_v13 = vadd.f32 1.0, %v2805_v40 }
 0xab9   :  { %v2807_v21 = vpop.eup %2806 }
 0xaba   :  { %v2809_v23 = vpop.eup %2808  ;;  %v1074_v3 = vmul.f32 0.6931472, %v2807_v21  ;;  %2830 = vlog2.f32 %v979_v13  ;;  %v937_v21 = vmax.f32 %v929_v44, 0.0 }
 0xabb   :  { %v2811_v29 = vpop.eup %2810  ;;  %2832 = vlog2.f32 %v1067_v30  ;;  %v982_v20 = vadd.f32 1.0, %v2809_v23 }
 0xabc   :  { %v2813_v7 = vpop.eup %2812  ;;  %v986_v11 = vmul.f32 0.6931472, %v2811_v29  ;;  %v1088_v43 = vadd.f32 %v1074_v3, %v1024_v19  ;;  %2834 = vpow2.f32 %v971_v12  ;;  %v940_v19 = vmax.f32 %v932_v63, 0.0 }
 0xabd   :  { %v2815_v40 = vpop.eup %2814  ;;  %v1072_v15 = vmul.f32 0.6931472, %v2813_v7  ;;  %2836 = vpow2.f32 %v1059_v28 }
 0xabe   :  { %v2817_v55 = vpop.eup %2816  ;;  %v1000_v53 = vadd.f32 %v986_v11, %v936_v35  ;;  %v1096_v59 = vsub.f32 0.0, %v1088_v43  ;;  %v984_v4 = vmul.f32 0.6931472, %v2815_v40  ;;  %2838 = vlog2.f32 %v982_v20 }
 0xabf   :  { %v2819_v56 = vpop.eup %2818  ;;  %v1087_v13 = vadd.f32 %v1072_v15, %v1023_v9  ;;  %v1078_v29 = vmul.f32 0.6931472, %v2817_v55 }
 0xac0   :  { %v2821_v44 = vpop.eup %2820  ;;  %v1008_v30 = vsub.f32 0.0, %v1000_v53  ;;  %v1104_v3 = vmax.f32 %v1096_v59, -100.0  ;;  %v999_v7 = vadd.f32 %v984_v4, %v935_v1  ;;  %v1070_v40 = vadd.f32 1.0, %v2819_v56 }
 0xac1   :  { %v2823_v23 = vpop.eup %2822  ;;  %v1095_v11 = vsub.f32 0.0, %v1087_v13  ;;  %v990_v43 = vmul.f32 0.6931472, %v2821_v44  ;;  %v1090_v35 = vadd.f32 %v1078_v29, %v1026_v41  ;;  %v3948_v13 = vsub.f32 1.0, %v3100_v52 }
 0xac2   :  { %v1016_v12 = vmax.f32 %v1008_v30, -100.0  ;;  %v1007_v9 = vsub.f32 0.0, %v999_v7  ;;  %v988_v55 = vmul.f32 0.6931472, %v2823_v23  ;;  %v2825_v37 = vpop.eup %2824  ;;  %v1128_v63 = vmul.f32 %v1120_v26, %v1104_v3 }
 0xac3   :  { %v1103_v28 = vmax.f32 %v1095_v11, -100.0  ;;  %v1002_v15 = vadd.f32 %v990_v43, %v938_v2  ;;  %v1098_v53 = vsub.f32 0.0, %v1090_v35  ;;  %v2827_v59 = vpop.eup %2826  ;;  %v1076_v8 = vmul.f32 0.6931472, %v2825_v37 }
 0xac4   :  { %v1112_v1 = vmul.f32 %v3096_v51, %v1016_v12  ;;  %v1015_v4 = vmax.f32 %v1007_v9, -100.0  ;;  %v1001_v27 = vadd.f32 %v988_v55, %v937_v21  ;;  %v2829_v36 = vpop.eup %2828  ;;  %v1082_v44 = vmul.f32 0.6931472, %v2827_v59 }
 0xac5   :  { %v1127_v41 = vmul.f32 %v3948_v13, %v1103_v28  ;;  %v1010_v20 = vsub.f32 0.0, %v1002_v15  ;;  %v1106_v29 = vmax.f32 %v1098_v53, -100.0  ;;  %v3585_v30 = vpop.f32.mrf.mxu1  ;;  %v1089_v3 = vadd.f32 %v1076_v8, %v1025_v10 }
 0xac6   :  { %v1136_v56 = vadd.f32 %v1128_v63, %v1112_v1  ;;  %v1111_v26 = vmul.f32 %v3100_v52, %v1015_v4  ;;  %v1009_v2 = vsub.f32 0.0, %v1001_v27  ;;  %v994_v23 = vmul.f32 0.6931472, %v2829_v36 }
 0xac7   :  { %v1018_v7 = vmax.f32 %v1010_v20, -100.0  ;;  %v1092_v51 = vadd.f32 %v1082_v44, %v1028_v24  ;;  %2840 = vlog2.f32 %v1070_v40  ;;  %v3588_v21 = vpop.f32.mrf.mxu1  ;;  %v2831_v11 = vpop.eup %2830  ;;  %v1097_v9 = vsub.f32 0.0, %v1089_v3 }
 0xac8   :  { %v1144_v43 = vsub.f32 0.0, %v1136_v56  ;;  %v1135_v35 = vadd.f32 %v1127_v41, %v1111_v26  ;;  %v1017_v12 = vmax.f32 %v1009_v2, -100.0  ;;  %1553 = vperm.xlu0 %2670, %v3588_v21   ;;  %v2833_v55 = vpop.eup %2832  ;;  %v3949_v52 = vsub.f32 1.0, %v3088_v49 }
 0xac9   :  { %v1114_v37 = vmul.f32 %v3088_v49, %v1018_v7  ;;  %v1004_v8 = vadd.f32 %v994_v23, %v940_v19  ;;  %v992_v10 = vmul.f32 0.6931472, %v2831_v11  ;;  %v1105_v24 = vmax.f32 %v1097_v9, -100.0  ;;  %v2835_v15 = vpop.eup %2834 }
 0xaca   :  { %v1130_v63 = vmul.f32 %v3949_v52, %v1106_v29  ;;  %v1143_v36 = vsub.f32 0.0, %v1135_v35  ;;  %v1113_v40 = vmul.f32 %v3092_v50, %v1017_v12  ;;  %v1100_v28 = vsub.f32 0.0, %v1092_v51  ;;  %v2837_v27 = vpop.eup %2836 }
 0xacb   :  { %v1012_v59 = vsub.f32 0.0, %v1004_v8  ;;  %v1003_v1 = vadd.f32 %v992_v10, %v939_v58  ;;  %v1027_v4 = vmax.f32 %v3538_v17, 0.0  ;;  %v1153_v13 = vsel %vm1151_vm12, %v1144_v43, 0.0  ;;  %v2839_v2 = vpop.eup %2838 }
 0xacc   :  { %v1138_v53 = vadd.f32 %v1130_v63, %v1114_v37  ;;  %v1152_v41 = vsel %vm1151_vm12, %v1143_v36, 0.0  ;;  %v3950_v49 = vsub.f32 1.0, %v3092_v50  ;;  %v1080_v20 = vmul.f32 0.6931472, %v2833_v55 }
 0xacd   :  { %v3951_v29 = vmov 1   ;;  %v1154_v44 = vadd.f32 %v1153_v13, %v1152_v41  ;;  %v1020_v56 = vmax.f32 %v1012_v59, -100.0  ;;  %v1124_v26 = vsub.f32 1.0, %v3077_v46 }
 0xace   :  { %v1129_v19 = vmul.f32 %v3950_v49, %v1105_v24  ;;  %2671 = vset.pattern.permute.xlu0 %v3951_v29  ;;  %v1108_v58 = vmax.f32 %v1100_v28, -100.0  ;;  %v1011_v7 = vsub.f32 0.0, %v1003_v1  ;;  %v1091_v17 = vadd.f32 %v1080_v20, %v1027_v4 }
 0xacf   :  { %v1146_v23 = vsub.f32 0.0, %v1138_v53  ;;  %v981_v51 = vadd.f32 1.0, %v2835_v15  ;;  %v1069_v11 = vadd.f32 1.0, %v2837_v27  ;;  %2842 = vrcp.f32 %v3588_v21  ;;  %v3610_v27 = vpop.f32.mrf.mxu0 }
 0xad0   :  { %v1137_v3 = vadd.f32 %v1129_v19, %v1113_v40  ;;  %v1116_v50 = vmul.f32 %v3077_v46, %v1020_v56  ;;  %v1019_v35 = vmax.f32 %v1011_v7, -100.0  ;;  %v1099_v12 = vsub.f32 0.0, %v1091_v17 }
 0xad1   :  { %v1123_v9 = vsub.f32 1.0, %v3084_v48  ;;  %2844 = vlog2.f32 %v981_v51  ;;  %v1132_v37 = vmul.f32 %v1124_v26, %v1108_v58  ;;  %v1157_v40 = vsel %vm1151_vm12, %v1146_v23, 0.0  ;;  %v1542_v56 = vpop.f32.mrf.mxu0 }
 0xad2   :  { %v1145_v43 = vsub.f32 0.0, %v1137_v3  ;;  %v1107_v52 = vmax.f32 %v1099_v12, -100.0  ;;  %v1115_v63 = vmul.f32 %v3084_v48, %v1019_v35  ;;  %2846 = vlog2.f32 %v1069_v11 }
 0xad3   :  { %v1140_v36 = vadd.f32 %v1132_v37, %v1116_v50  ;;  %v998_v28 = vmul.f32 0.6931472, %v2839_v2  ;;  %v3952_v53 = vsub.f32 0.0, %v3545_v16  ;;  %v1030_v48 = vmax.f32 %v3545_v16, 0.0 }
 0xad4   :  { %v1155_v55 = vsel %vm1151_vm12, %v1145_v43, 0.0  ;;  %v2841_v10 = vpop.eup %2840  ;;  %v1131_v24 = vmul.f32 %v1123_v9, %v1107_v52  ;;  %v3953_v23 = vsub.f32 0.0, %v3555_v0  ;;  %v1029_v50 = vmax.f32 %v3555_v0, 0.0 }
 0xad5   :  { %v1156_v8 = vadd.f32 %v1155_v55, %v1154_v44  ;;  %v942_v59 = vmax.f32 %v3952_v53, 0.0  ;;  %v1086_v1 = vmul.f32 0.6931472, %v2841_v10  ;;  %v1148_v13 = vsub.f32 0.0, %v1140_v36 }
 0xad6   :  { %v1139_v15 = vadd.f32 %v1131_v24, %v1115_v63  ;;  %v941_v51 = vmax.f32 %v3953_v23, 0.0  ;;  %v1126_v10 = vsub.f32 1.0, %v3075_v45 }
 0xad7   :  { %v1158_v46 = vadd.f32 %v1157_v40, %v1156_v8  ;;  %v1006_v41 = vadd.f32 %v998_v28, %v942_v59  ;;  %v1094_v19 = vadd.f32 %v1086_v1, %v1030_v48  ;;  %v1161_v26 = vsel %vm1151_vm12, %v1148_v13, 0.0 }
 0xad8   :  { %v1147_v4 = vsub.f32 0.0, %v1139_v15  ;;  %v1125_v15 = vsub.f32 1.0, %v3080_v47 }
 0xad9   :  { %v1014_v2 = vsub.f32 0.0, %v1006_v41  ;;  %v1102_v17 = vsub.f32 0.0, %v1094_v19 }
 0xada   :  { %v1159_v49 = vsel %vm1151_vm12, %v1147_v4, 0.0 }
 0xadb   :  { %v1160_v20 = vadd.f32 %v1159_v49, %v1158_v46  ;;  %v1022_v35 = vmax.f32 %v1014_v2, -100.0  ;;  %v1110_v37 = vmax.f32 %v1102_v17, -100.0 }
 0xadc   :  { %v2843_v44 = vpop.eup %2842 }
 0xadd   :  { %v1559_v3 = vmul.f32 %v2843_v44, %v1542_v56  ;;  %v1162_v58 = vadd.f32 %v1161_v26, %v1160_v20  ;;  %v1118_v40 = vmul.f32 %v3075_v45, %v1022_v35  ;;  %v1134_v28 = vmul.f32 %v1126_v10, %v1110_v37 }
 0xade   :  { %v2845_v7 = vpop.eup %2844  ;;  %v3955_v10 = vmov 3  }
 0xadf   :  { %v996_v11 = vmul.f32 0.6931472, %v2845_v7  ;;  %v1578_v43 = vrot.slane %v1559_v3, %v3123_v60  ;;  %v2847_v16 = vpop.eup %2846  ;;  %v1142_v59 = vadd.f32 %v1134_v28, %v1118_v40 }
 0xae0   :  { %v1084_v9 = vmul.f32 0.6931472, %v2847_v16 }
 0xae1   :  { %v1005_v12 = vadd.f32 %v996_v11, %v941_v51  ;;  %v3620_v55 = vmul.f32 %v3585_v30, %v1578_v43  ;;  %v1150_v13 = vsub.f32 0.0, %v1142_v59  ;;  %v1579_v17 = vmul.f32 %v1578_v43, %v3588_v21 }
 0xae2   :  { %v1093_v63 = vadd.f32 %v1084_v9, %v1029_v50 }
 0xae3   :  { %v1013_v52 = vsub.f32 0.0, %v1005_v12  ;;  %v1582_v8 = vsub.f32 %v3610_v27, %v3620_v55  ;;  %v1165_v49 = vsel %vm1151_vm12, %v1150_v13, 0.0  ;;  %v1581_v23 = vsub.f32 %v1542_v56, %v1579_v17 }
 0xae4   :  { %v1101_v24 = vsub.f32 0.0, %v1093_v63 }
 0xae5   :  { %v1021_v36 = vmax.f32 %v1013_v52, -100.0  ;;  %v1583_v16 = vsel %vm405_vm3, %v1578_v43, %v1581_v23 }
 0xae6   :  { %v1109_v0 = vmax.f32 %v1101_v24, -100.0 }
 0xae7   :  { %v1117_v46 = vmul.f32 %v3080_v47, %v1021_v36 }
 0xae8   :  { %v1133_v53 = vmul.f32 %v1125_v15, %v1109_v0 }
 0xaea   :  { %v1141_v1 = vadd.f32 %v1133_v53, %v1117_v46 }
 0xaec   :  { %v1149_v4 = vsub.f32 0.0, %v1141_v1 }
 0xaee   :  { %v1163_v41 = vsel %vm1151_vm12, %v1149_v4, 0.0 }
 0xaef   :  { %v1164_v48 = vadd.f32 %v1163_v41, %v1162_v58  ;;  %v3954_v58 = vmov 2  }
 0xaf1   :  { %v3630_v19 = vadd.f32 %v1165_v49, %v1164_v48 }
 0xb43   :  { %v1554_v20 = vpop.permute.xlu0 %1553 }
 0xb44   :  { %2848 = vrcp.f32 %v1554_v20 }
 0xb51   :  { %v2849_v45 = vpop.eup %2848 }
 0xb52   :  { %v1557_v44 = vmul.f32 %v2849_v45, %v3588_v21 }
 0xb54   :  { %v3634_v26 = vrot.slane %v1557_v44, %v3123_v60 }
 0xb56   :  { %v1569_v47 = vmul.f32 %v3634_v26, %v1554_v20  ;;  %v3956_v20 = vmov 0  }
 0xb58   :  { %v1571_v2 = vsub.f32 %v3588_v21, %v1569_v47 }
 0xb5a   :  { %v1573_v3 = vsel %vm405_vm3, %v3634_v26, %v1571_v2 }
 0xb5b   :  { %1592 = vrot.lane.b32.xlu0 %v1573_v3, %s2981_s28 }
 0xb5f   :  { %1587 = vperm.xlu0 %2671, %v1573_v3  }
 0xb63   :  { %2672 = vset.pattern.permute.xlu0 %v3954_v58 }
 0xbcd   :  { %v1593_v7 = vpop.permute.xlu0 %1592 }
 0xbce   :  { %2850 = vrcp.f32 %v1593_v7 }
 0xbda   :  { %v1588_v51 = vpop.permute.xlu0 %1587 }
 0xbdb   :  { %v2851_v11 = vpop.eup %2850  ;;  %2852 = vrcp.f32 %v1588_v51 }
 0xbdc   :  { %v1596_v50 = vmul.f32 %v2851_v11, %v1583_v16 }
 0xbde   :  { %v1615_v35 = vrot.slane %v1596_v50, %v3142_v14 }
 0xbe0   :  { %1617 = vrot.lane.b32.xlu0 %v1615_v35, %s2983_s29 }
 0xbe8   :  { %v2853_v12 = vpop.eup %2852 }
 0xbe9   :  { %v1591_v9 = vmul.f32 %v2853_v12, %v1573_v3 }
 0xbeb   :  { %v3649_v37 = vrot.slane %v1591_v9, %v3142_v14 }
 0xbed   :  { %v1606_v52 = vmul.f32 %v3649_v37, %v1588_v51 }
 0xbef   :  { %v1608_v21 = vsub.f32 %v1573_v3, %v1606_v52 }
 0xbf1   :  { %v1610_v56 = vsel %vm444_vm4, %v3649_v37, %v1608_v21  ;;  %v3957_v21 = vmov 4  }
 0xbf2   :  { %1641 = vrot.lane.b32.xlu0 %v1610_v56, %s2984_s30 }
 0xc52   :  { %v3656_v43 = vpop.permute.xlu0 %1617 }
 0xc53   :  { %v1620_v63 = vmul.f32 %v3656_v43, %v1573_v3 }
 0xc55   :  { %1624 = vrot.lane.b32.xlu0 %v1620_v63, %s2981_s28 }
 0xc59   :  { %1636 = vperm.xlu0 %2672, %v1610_v56  }
 0xc5d   :  { %2673 = vset.pattern.permute.xlu0 %v3955_v10 }
 0xc64   :  { %v1642_v14 = vpop.permute.xlu0 %1641 }
 0xc65   :  { %2854 = vrcp.f32 %v1642_v14 }
 0xc72   :  { %v2855_v40 = vpop.eup %2854 }
 0xcc7   :  { %v1625_v36 = vpop.permute.xlu0 %1624 }
 0xcc8   :  { %v1630_v24 = vsub.f32 %v1583_v16, %v1625_v36 }
 0xcca   :  { %v1632_v28 = vsel %vm444_vm4, %v1615_v35, %v1630_v24 }
 0xccb   :  { %v1645_v0 = vmul.f32 %v2855_v40, %v1632_v28 }
 0xccd   :  { %v1664_v46 = vrot.slane %v1645_v0, %v3163_v32 }
 0xccf   :  { %1666 = vrot.lane.b32.xlu0 %v1664_v46, %s2986_s3 }
 0xcd4   :  { %v1637_v15 = vpop.permute.xlu0 %1636 }
 0xcd5   :  { %2856 = vrcp.f32 %v1637_v15 }
 0xce2   :  { %v2857_v53 = vpop.eup %2856 }
 0xce3   :  { %v1640_v59 = vmul.f32 %v2857_v53, %v1610_v56 }
 0xce5   :  { %v3666_v1 = vrot.slane %v1640_v59, %v3163_v32 }
 0xce7   :  { %v1655_v4 = vmul.f32 %v3666_v1, %v1637_v15 }
 0xce9   :  { %v1657_v13 = vsub.f32 %v1610_v56, %v1655_v4 }
 0xceb   :  { %v1659_v41 = vsel %vm495_vm5, %v3666_v1, %v1657_v13 }
 0xcec   :  { %1690 = vrot.lane.b32.xlu0 %v1659_v41, %s2987_s4 }
 0xd41   :  { %v3673_v48 = vpop.permute.xlu0 %1666 }
 0xd42   :  { %v1669_v49 = vmul.f32 %v3673_v48, %v1610_v56 }
 0xd44   :  { %1673 = vrot.lane.b32.xlu0 %v1669_v49, %s2984_s30 }
 0xd48   :  { %1685 = vperm.xlu0 %2673, %v1659_v41  }
 0xd4c   :  { %2674 = vset.pattern.permute.xlu0 %v3956_v20 }
 0xd5e   :  { %v1691_v32 = vpop.permute.xlu0 %1690 }
 0xd5f   :  { %2858 = vrcp.f32 %v1691_v32 }
 0xd6c   :  { %v2859_v47 = vpop.eup %2858 }
 0xdb6   :  { %v1674_v45 = vpop.permute.xlu0 %1673 }
 0xdb7   :  { %v1679_v44 = vsub.f32 %v1632_v28, %v1674_v45 }
 0xdb9   :  { %v1681_v2 = vsel %vm495_vm5, %v1664_v46, %v1679_v44 }
 0xdba   :  { %v1694_v3 = vmul.f32 %v2859_v47, %v1681_v2 }
 0xdbc   :  { %v1713_v7 = vrot.slane %v1694_v3, %v3184_v62 }
 0xdbe   :  { %1715 = vrot.lane.b32.xlu0 %v1713_v7, %s2988_s5 }
 0xdc2   :  { %1562 = vperm.xlu0 %2674, %v3585_v30  }
 0xdc3   :  { %v1686_v17 = vpop.permute.xlu0 %1685 }
 0xdc4   :  { %2860 = vrcp.f32 %v1686_v17 }
 0xdc6   :  { %2675 = vset.pattern.permute.xlu0 %v3951_v29 }
 0xdd1   :  { %v2861_v23 = vpop.eup %2860 }
 0xdd2   :  { %v1689_v51 = vmul.f32 %v2861_v23, %v1659_v41 }
 0xdd4   :  { %v3685_v11 = vrot.slane %v1689_v51, %v3184_v62 }
 0xdd6   :  { %v1704_v16 = vmul.f32 %v3685_v11, %v1686_v17 }
 0xdd8   :  { %v1706_v50 = vsub.f32 %v1659_v41, %v1704_v16 }
 0xdda   :  { %v1708_v35 = vsel %vm546_vm6, %v3685_v11, %v1706_v50 }
 0xddb   :  { %1739 = vrot.lane.b32.xlu1 %v1708_v35, %s2989_s6 }
 0xe30   :  { %v3692_v12 = vpop.permute.xlu0 %1715 }
 0xe31   :  { %v1718_v9 = vmul.f32 %v3692_v12, %v1659_v41 }
 0xe33   :  { %1722 = vrot.lane.b32.xlu0 %v1718_v9, %s2987_s4 }
 0xe3d   :  { %v1563_v29 = vpop.permute.xlu0 %1562 }
 0xe3e   :  { %v1570_v52 = vmul.f32 %v3634_v26, %v1563_v29 }
 0xe40   :  { %v3698_v62 = vsub.f32 %v3585_v30, %v1570_v52  ;;  %v3958_v52 = vmov 6  }
 0xe42   :  { %1599 = vperm.xlu0 %2675, %v3698_v62  }
 0xe46   :  { %2676 = vset.pattern.permute.xlu0 %v3957_v21 }
 0xe47   :  { %1734 = vperm.xlu0 %2676, %v1708_v35  }
 0xe4b   :  { %2677 = vset.pattern.permute.xlu0 %v3954_v58 }
 0xe4d   :  { %v1740_v56 = vpop.permute.xlu1 %1739 }
 0xe4e   :  { %2862 = vrcp.f32 %v1740_v56 }
 0xe5b   :  { %v2863_v36 = vpop.eup %2862 }
 0xea5   :  { %v1723_v63 = vpop.permute.xlu0 %1722 }
 0xea6   :  { %v1728_v14 = vsub.f32 %v1681_v2, %v1723_v63 }
 0xea8   :  { %v1730_v24 = vsel %vm546_vm6, %v1713_v7, %v1728_v14 }
 0xea9   :  { %v1743_v40 = vmul.f32 %v2863_v36, %v1730_v24  ;;  %v3959_v36 = vmov 7  }
 0xeab   :  { %v1762_v26 = vrot.slane %v1743_v40, %v3214_v5 }
 0xead   :  { %1764 = vrot.lane.b32.xlu0 %v1762_v26, %s2992_s7 }
 0xebd   :  { %v1600_v30 = vpop.permute.xlu0 %1599 }
 0xebe   :  { %v1607_v28 = vmul.f32 %v3649_v37, %v1600_v30 }
 0xec0   :  { %v3709_v0 = vsub.f32 %v3698_v62, %v1607_v28 }
 0xec2   :  { %1648 = vperm.xlu0 %2677, %v3709_v0   ;;  %v1735_v58 = vpop.permute.xlu0 %1734 }
 0xec3   :  { %2864 = vrcp.f32 %v1735_v58 }
 0xec6   :  { %2678 = vset.pattern.permute.xlu0 %v3955_v10 }
 0xed0   :  { %v2865_v46 = vpop.eup %2864 }
 0xed1   :  { %v1738_v15 = vmul.f32 %v2865_v46, %v1708_v35 }
 0xed3   :  { %v1752_v53 = vrot.slane %v1738_v15, %v3214_v5 }
 0xed5   :  { %v1753_v59 = vmul.f32 %v1752_v53, %v1735_v58 }
 0xed7   :  { %v1755_v4 = vsub.f32 %v1708_v35, %v1753_v59 }
 0xed9   :  { %v1757_v13 = vsel %vm597_vm7, %v1752_v53, %v1755_v4 }
 0xeda   :  { %1788 = vrot.lane.b32.xlu1 %v1757_v13, %s2993_s8 }
 0xf1f   :  { %v3717_v37 = vpop.permute.xlu0 %1764 }
 0xf20   :  { %v1767_v41 = vmul.f32 %v3717_v37, %v1708_v35 }
 0xf22   :  { %1771 = vrot.lane.b32.xlu1 %v1767_v41, %s2989_s6 }
 0xf26   :  { %1783 = vperm.xlu1 %2679, %v1757_v13  }
 0xf3d   :  { %v1649_v49 = vpop.permute.xlu0 %1648 }
 0xf3e   :  { %v1656_v10 = vmul.f32 %v3666_v1, %v1649_v49 }
 0xf40   :  { %v3723_v20 = vsub.f32 %v3709_v0, %v1656_v10 }
 0xf42   :  { %1697 = vperm.xlu0 %2678, %v3723_v20  }
 0xf46   :  { %2680 = vset.pattern.permute.xlu0 %v3957_v21 }
 0xf4c   :  { %v1789_v5 = vpop.permute.xlu1 %1788 }
 0xf4d   :  { %2866 = vrcp.f32 %v1789_v5 }
 0xf5a   :  { %v2867_v44 = vpop.eup %2866 }
 0xf94   :  { %v1772_v32 = vpop.permute.xlu1 %1771 }
 0xf95   :  { %v1777_v45 = vsub.f32 %v1730_v24, %v1772_v32 }
 0xf97   :  { %v1779_v47 = vsel %vm597_vm7, %v1762_v26, %v1777_v45 }
 0xf98   :  { %v1792_v2 = vmul.f32 %v2867_v44, %v1779_v47 }
 0xf9a   :  { %v1811_v3 = vrot.slane %v1792_v2, %v3243_v6 }
 0xf9c   :  { %1813 = vrot.lane.b32.xlu1 %v1811_v3, %s2995_s9 }
 0xfa1   :  { %v1784_v1 = vpop.permute.xlu1 %1783 }
 0xfa2   :  { %2868 = vrcp.f32 %v1784_v1 }
 0xfaf   :  { %v2869_v7 = vpop.eup %2868 }
 0xfb0   :  { %v1787_v17 = vmul.f32 %v2869_v7, %v1757_v13 }
 0xfb2   :  { %v1801_v23 = vrot.slane %v1787_v17, %v3243_v6 }
 0xfb4   :  { %v1802_v51 = vmul.f32 %v1801_v23, %v1784_v1 }
 0xfb6   :  { %v1804_v16 = vsub.f32 %v1757_v13, %v1802_v51 }
 0xfb8   :  { %v1806_v50 = vsel %vm648_vm8, %v1801_v23, %v1804_v16  ;;  %v1621_v16 = vmul.f32 %v3656_v43, %v3698_v62 }
 0xfb9   :  { %1837 = vrot.lane.b32.xlu1 %v1806_v50, %s2996_s10 }
 0xfbd   :  { %v1698_v35 = vpop.permute.xlu0 %1697 }
 0xfbe   :  { %v1705_v9 = vmul.f32 %v3685_v11, %v1698_v35 }
 0xfc0   :  { %v1707_v29 = vsub.f32 %v3723_v20, %v1705_v9 }
 0xfc2   :  { %1746 = vperm.xlu0 %2680, %v1707_v29   ;;  %v1768_v35 = vmul.f32 %v3717_v37, %v1707_v29 }
 0xfc6   :  { %2681 = vset.pattern.permute.xlu0 %v3958_v52 }
 0xfc7   :  { %1832 = vperm.xlu0 %2681, %v1806_v50  }
0x100e   :  { %v3738_v21 = vpop.permute.xlu1 %1813 }
0x100f   :  { %v1816_v6 = vmul.f32 %v3738_v21, %v1757_v13 }
0x1011   :  { %1820 = vrot.lane.b32.xlu1 %v1816_v6, %s2993_s8 }
0x102b   :  { %v1838_v11 = vpop.permute.xlu1 %1837 }
0x103d   :  { %v1747_v56 = vpop.permute.xlu0 %1746 }
0x103e   :  { %v1754_v63 = vmul.f32 %v1752_v53, %v1747_v56 }
0x1040   :  { %v1756_v14 = vsub.f32 %v1707_v29, %v1754_v63 }
0x1042   :  { %1795 = vperm.xlu1 %2679, %v1756_v14   ;;  %v1833_v24 = vpop.permute.xlu0 %1832 }
0x1043   :  { %2870 = vrcp.f32 %v1833_v24 }
0x1044   :  { %2872 = vrcp.f32 %v1838_v11 }
0x1046   :  { %2682 = vset.pattern.permute.xlu1 %v3959_v36 }
0x1050   :  { %v2871_v40 = vpop.eup %2870 }
0x1051   :  { %v1836_v26 = vmul.f32 %v2871_v40, %v1806_v50  ;;  %v2873_v46 = vpop.eup %2872 }
0x1053   :  { %v1850_v30 = vrot.slane %v1836_v26, %v3270_v42 }
0x1055   :  { %v1851_v15 = vmul.f32 %v1850_v30, %v1833_v24 }
0x1057   :  { %v1853_v13 = vsub.f32 %v1806_v50, %v1851_v15 }
0x1059   :  { %v3750_v41 = vsel %vm699_vm9, %v1850_v30, %v1853_v13 }
0x1083   :  { %v1821_v28 = vpop.permute.xlu1 %1820 }
0x1084   :  { %v1826_v58 = vsub.f32 %v1779_v47, %v1821_v28 }
0x1086   :  { %v1828_v59 = vsel %vm648_vm8, %v1811_v3, %v1826_v58 }
0x1087   :  { %v1841_v53 = vmul.f32 %v2873_v46, %v1828_v59 }
0x1089   :  { %v1860_v4 = vrot.slane %v1841_v53, %v3270_v42 }
0x108b   :  { %1862 = vrot.lane.b32.xlu1 %v1860_v4, %s2998_s11 }
0x108f   :  { %1886 = vrot.lane.b32.xlu1 %v3750_v41, %s2999_s12 }
0x1093   :  { %1881 = vperm.xlu1 %2682, %v3750_v41  }
0x10bd   :  { %v1796_v49 = vpop.permute.xlu1 %1795 }
0x10be   :  { %v1803_v10 = vmul.f32 %v1801_v23, %v1796_v49 }
0x10c0   :  { %v1805_v5 = vsub.f32 %v1756_v14, %v1803_v10 }
0x10c2   :  { %1844 = vperm.xlu0 %2681, %v1805_v5  }
0x10c6   :  { %2683 = vset.pattern.permute.xlu0 %v3959_v36 }
0x10fd   :  { %v1863_v32 = vpop.permute.xlu1 %1862 }
0x10fe   :  { %v1865_v42 = vmul.f32 %v1863_v32, %v1806_v50  ;;  %v1670_v50 = vmul.f32 %v3673_v48, %v3709_v0  ;;  %v1866_v9 = vmul.f32 %v1863_v32, %v1805_v5  ;;  %v1719_v48 = vmul.f32 %v3692_v12, %v3723_v20 }
0x10ff   :  { %v1817_v0 = vmul.f32 %v3738_v21, %v1756_v14 }
0x1100   :  { %1869 = vrot.lane.b32.xlu0 %v1865_v42, %s2996_s10 }
0x1101   :  { %v1887_v2 = vpop.permute.xlu1 %1886 }
0x1102   :  { %2874 = vrcp.f32 %v1887_v2 }
0x110e   :  { %v1882_v52 = vpop.permute.xlu1 %1881 }
0x110f   :  { %v2875_v7 = vpop.eup %2874  ;;  %2876 = vrcp.f32 %v1882_v52 }
0x111c   :  { %v2877_v6 = vpop.eup %2876 }
0x111d   :  { %v1885_v56 = vmul.f32 %v2877_v6, %v3750_v41 }
0x111f   :  { %v1899_v43 = vrot.slane %v1885_v56, %v3294_v38 }
0x1121   :  { %v1900_v27 = vmul.f32 %v1899_v43, %v1882_v52 }
0x1123   :  { %v1902_v55 = vsub.f32 %v3750_v41, %v1900_v27 }
0x113d   :  { %v1845_v45 = vpop.permute.xlu0 %1844 }
0x113e   :  { %v1852_v44 = vmul.f32 %v1850_v30, %v1845_v45 }
0x1140   :  { %v1854_v47 = vsub.f32 %v1805_v5, %v1852_v44 }
0x1142   :  { %1893 = vperm.xlu0 %2683, %v1854_v47  }
0x1172   :  { %v1870_v3 = vpop.permute.xlu0 %1869 }
0x1173   :  { %v1875_v1 = vsub.f32 %v1828_v59, %v1870_v3 }
0x1175   :  { %v3759_v17 = vsel %vm699_vm9, %v1860_v4, %v1875_v1  ;;  %v2954_v1 = vld [vmem:[%s3931_s0 + $0x68] sm:$0xff] }
0x1176   :  { %v1890_v23 = vmul.f32 %v2875_v7, %v3759_v17  ;;  %v2955_v7 = vld [vmem:[%s3931_s0 + $0x70] sm:$0xff] }
0x1178   :  { %v3763_v51 = vrot.slane %v1890_v23, %v3294_v38 }
0x117a   :  { %1911 = vrot.lane.b32.xlu1 %v3763_v51, %s3000_s13 }
0x117e   :  { %1626 = vrot.lane.b32.xlu1 %v1621_v16, %s2981_s28 }
0x1182   :  { %1675 = vrot.lane.b32.xlu1 %v1670_v50, %s2984_s30 }
0x1186   :  { %1773 = vrot.lane.b32.xlu1 %v1768_v35, %s2989_s6 }
0x118a   :  { %1871 = vrot.lane.b32.xlu1 %v1866_v9, %s2996_s10 }
0x11bd   :  { %v1894_v62 = vpop.permute.xlu0 %1893 }
0x11be   :  { %v1901_v63 = vmul.f32 %v1899_v43, %v1894_v62 }
0x11c0   :  { %v1903_v36 = vsub.f32 %v1854_v47, %v1901_v63 }
0x11c2   :  { %1929 = vrot.lane.b32.xlu0 %v1903_v36, %s3001_s14 }
0x11c6   :  { %1724 = vrot.lane.b32.xlu0 %v1719_v48, %s2987_s4 }
0x11ca   :  { %1822 = vrot.lane.b32.xlu0 %v1817_v0, %s2993_s8 }
0x11ec   :  { %v1912_v37 = vpop.permute.xlu1 %1911 }
0x11ed   :  { %v1915_v29 = vmul.f32 %v1912_v37, %v1854_v47  ;;  %v1914_v38 = vmul.f32 %v1912_v37, %v3750_v41 }
0x11ef   :  { %1920 = vrot.lane.b32.xlu0 %v1915_v29, %s2999_s12 }
0x11f0   :  { %v1627_v24 = vpop.permute.xlu1 %1626 }
0x11f1   :  { %v1631_v12 = vsub.f32 %v1582_v8, %v1627_v24  ;;  %v1904_v8 = vsel %vm750_vm10, %v1899_v43, %v1902_v55 }
0x11f3   :  { %1918 = vrot.lane.b32.xlu0 %v1914_v38, %s2999_s12 }
0x11f4   :  { %v1676_v40 = vpop.permute.xlu1 %1675 }
0x11f5   :  { %v1680_v26 = vsub.f32 %v1631_v12, %v1676_v40 }
0x11f8   :  { %v1774_v14 = vpop.permute.xlu1 %1773 }
0x11fc   :  { %v1872_v46 = vpop.permute.xlu1 %1871 }
0x1234   :  { %v1930_v11 = vpop.permute.xlu0 %1929 }
0x1235   :  { %2878 = vrcp.f32 %v1930_v11 }
0x1238   :  { %v1725_v20 = vpop.permute.xlu0 %1724 }
0x1239   :  { %v1729_v21 = vsub.f32 %v1680_v26, %v1725_v20 }
0x123b   :  { %v1778_v30 = vsub.f32 %v1729_v21, %v1774_v14 }
0x123c   :  { %v1823_v28 = vpop.permute.xlu0 %1822 }
0x123d   :  { %v1827_v58 = vsub.f32 %v1778_v30, %v1823_v28 }
0x123f   :  { %v1876_v15 = vsub.f32 %v1827_v58, %v1872_v46 }
0x1242   :  { %v2879_v4 = vpop.eup %2878 }
0x1261   :  { %v1921_v59 = vpop.permute.xlu0 %1920 }
0x1262   :  { %v1925_v53 = vsub.f32 %v1876_v15, %v1921_v59 }
0x1264   :  { %v1933_v13 = vmul.f32 %v2879_v4, %v1925_v53 }
0x1265   :  { %v1919_v42 = vpop.permute.xlu0 %1918 }
0x1266   :  { %v1937_v49 = vrot.slane %v1933_v13, %v3123_v60  ;;  %v1924_v60 = vsub.f32 %v3759_v17, %v1919_v42  ;;  %v2956_v17 = vld [vmem:[%s3931_s0 + $0x78] sm:$0xff] }
0x1268   :  { %1939 = vrot.lane.b32.xlu1 %v1937_v49, %s3002_s17  ;;  %v1926_v41 = vsel %vm750_vm10, %v3763_v51, %v1924_v60 }
0x12da   :  { %v1940_v10 = vpop.permute.xlu1 %1939 }
0x12db   :  { %v1942_v5 = vmul.f32 %v1940_v10, %v1904_v8  ;;  %v1943_v32 = vmul.f32 %v1940_v10, %v1903_v36 }
0x12dd   :  { %1948 = vrot.lane.b32.xlu1 %v1943_v32, %s3001_s14  ;;  %1946 = vrot.lane.b32.xlu0 %v1942_v5, %s3001_s14  ;;  %s3003_s14 = smov [#allocation2]  }
0x12de   :  { %s2325_s17 = sshll.u32 %s3003_s14, 4  ;;  %s2326_s17 = int_to_ptr.vmem [resolvable:$true] %s2325_s17 }
0x12df   :  { %s2957_s19 = scalar_lea.vmem %s2326_s17, 16  ;;  %s2961_s20 = scalar_lea.vmem %s2326_s17, 32 }
0x12e0   :  { %p2958_p0 = scmp.ne.s32.totalorder %s2326_s17, %s2957_s19  ;;  %p2962_p1 = scmp.lt.s32.totalorder %s2326_s17, %s2326_s17 }
0x12e1   :  { %p2963_p2 = scmp.lt.s32.totalorder %s2961_s20, %s2957_s19 }
0x12e3   :  { %p2964_p3 = por %p2963_p2, %p2962_p1 }
0x12e5   :  { %p2965_p4 = pnand %p2964_p3, %p2958_p0 }
0x1301   :  { %1167 = vadd.xlane.f32.xlu1 %v3630_v19  ;;  %v2953_v19 = vld [vmem:[%s3931_s0 + $0x60] sm:$0xff] }
0x134f   :  { %v1949_v45 = vpop.permute.xlu1 %1948  ;;  %v1947_v47 = vpop.permute.xlu0 %1946 }
0x1350   :  { %v1953_v44 = vsub.f32 %v1925_v53, %v1949_v45  ;;  %v1952_v3 = vsub.f32 %v1926_v41, %v1947_v47 }
0x1352   :  { %v1955_v2 = vsel %vm796_vm11, %v1937_v49, %v1953_v44 }
0x1353   :  { %2605 = vmatprep.subr.msk.mxu0 %vm47_vm0, %v1955_v2  ;;  %2621 = vmatprep.subr.msk.mxu1 %vm47_vm0, %v1955_v2 }
0x1354   :  { %2606 = vmatpush3.msk.msra.mxu0 %vm47_vm0, %v1955_v2  ;;  %2623 = vmatpush3.msk.msra.mxu1 %vm47_vm0, %v1955_v2 }
0x1355   :  { %2607 = vmatprep.subr.mxu0 %v1952_v3  ;;  %2622 = vmatprep.subr.mxu1 %v1952_v3 }
0x1356   :  { %2608 = vmatpush3.msra.mxu0 %v1952_v3  ;;  %2624 = vmatpush3.msra.mxu1 %v1952_v3 }
0x1357   :  { %2610 = vmatmul.mubr.msk.f32.vlgmr.msra.gmra.mxu0 %vm22_vm1, %v2951_v57  ;;  %2613 = vmatmul.mubr.msk.f32.vlgmr.msra.gmra.mxu1 %vm22_vm1, %v2952_v39 }
0x1358   :  { %2615 = vmatprep.mubr.msk.f32.mxu1 %vm22_vm1, %v2953_v19 }
0x135b   :  { %2616 = vmatmul.mubr.msk.f32.gmra.mxu1 %vm22_vm1, %v2954_v1 }
0x135c   :  { %2618 = vmatprep.mubr.msk.f32.mxu1 %vm22_vm1, %v2955_v7 }
0x135f   :  { %2619 = vmatmul.mubr.msk.f32.gmra.mxu1 %vm22_vm1, %v2956_v17 }
0x138a   :  { %v1168_v23 = vpop.xlane.xlu1 %1167 }
0x138b   :  { %v1169_v51 = vrot.slane %v1168_v23, 4 }
0x138d   :  { %v1170_v16 = vadd.f32 %v1169_v51, %v1168_v23 }
0x138f   :  { %v1171_v50 = vrot.slane %v1170_v16, 2 }
0x1391   :  { %v1172_v35 = vadd.f32 %v1171_v50, %v1170_v16 }
0x1393   :  { %v1173_v9 = vrot.slane %v1172_v35, 1 }
0x1395   :  { %v1174_v52 = vadd.f32 %v1173_v9, %v1172_v35 }
0x1397   :  { %2625 = vpush %v1174_v52 }
0x13c8   :  { %s2626_s0 = spop %2625 }
0x1417   :  { %v3832_v6 = vpop.f32.mrf.mxu0  ;;  %v3834_v56 = vpop.f32.mrf.mxu1 }
0x1418   :  { %v2065_v43 = vsub.f32 0.0, %v3832_v6  ;;  %v2169_v62 = vand.u32 2147483647, %v3832_v6  ;;  %v2067_v63 = vsub.f32 0.0, %v3834_v56  ;;  %v2171_v36 = vand.u32 2147483647, %v3834_v56 }
0x1419   :  { %v3840_v48 = vpop.f32.mrf.mxu0  ;;  %v3842_v0 = vpop.f32.mrf.mxu1 }
0x141a   :  { %v2081_v37 = vand.u32 2147483647, %v2065_v43  ;;  %v2177_v29 = vsub.f32 0.0, %v2169_v62  ;;  %v2083_v38 = vand.u32 2147483647, %v2067_v63  ;;  %v2179_v24 = vsub.f32 0.0, %v2171_v36 }
0x141b   :  { %v2064_v11 = vsub.f32 0.0, %v3840_v48  ;;  %v3849_v40 = vpop.f32.mrf.mxu1  ;;  %v2168_v26 = vand.u32 2147483647, %v3840_v48  ;;  %v2066_v21 = vsub.f32 0.0, %v3842_v0  ;;  %v2170_v49 = vand.u32 2147483647, %v3842_v0 }
0x141c   :  { %v2089_v12 = vsub.f32 0.0, %v2081_v37  ;;  %v2186_v20 = vmul.f32 1.442695, %v2177_v29  ;;  %v2091_v14 = vsub.f32 0.0, %v2083_v38  ;;  %v2190_v4 = vmul.f32 1.442695, %v2179_v24 }
0x141d   :  { %v2080_v30 = vand.u32 2147483647, %v2064_v11  ;;  %v2176_v58 = vsub.f32 0.0, %v2168_v26  ;;  %v3855_v46 = vpop.f32.mrf.mxu1  ;;  %v2082_v53 = vand.u32 2147483647, %v2066_v21  ;;  %v2069_v8 = vsub.f32 0.0, %v3849_v40 }
0x141e   :  { %v2098_v28 = vmul.f32 1.442695, %v2089_v12  ;;  %2880 = vpow2.f32 %v2186_v20  ;;  %v2102_v15 = vmul.f32 1.442695, %v2091_v14  ;;  %v2178_v10 = vsub.f32 0.0, %v2170_v49 }
0x141f   :  { %v2088_v59 = vsub.f32 0.0, %v2080_v30  ;;  %v2184_v13 = vmul.f32 1.442695, %v2176_v58  ;;  %v2090_v55 = vsub.f32 0.0, %v2082_v53  ;;  %v2173_v5 = vand.u32 2147483647, %v3849_v40  ;;  %v3862_v32 = vpop.f32.mrf.mxu1 }
0x1420   :  { %2882 = vpow2.f32 %v2098_v28  ;;  %v2085_v60 = vand.u32 2147483647, %v2069_v8  ;;  %v2188_v45 = vmul.f32 1.442695, %v2178_v10  ;;  %v2068_v47 = vsub.f32 0.0, %v3855_v46 }
0x1421   :  { %2884 = vpow2.f32 %v2102_v15  ;;  %v2096_v27 = vmul.f32 1.442695, %v2088_v59  ;;  %v2100_v42 = vmul.f32 1.442695, %v2090_v55  ;;  %v2181_v44 = vsub.f32 0.0, %v2173_v5  ;;  %v3873_v9 = vpop.f32.mrf.mxu1 }
0x1422   :  { %2886 = vpow2.f32 %v2184_v13  ;;  %v2093_v41 = vsub.f32 0.0, %v2085_v60  ;;  %v2172_v2 = vand.u32 2147483647, %v3855_v46  ;;  %v2071_v3 = vsub.f32 0.0, %v3862_v32 }
0x1423   :  { %2888 = vpow2.f32 %v2096_v27  ;;  %v2194_v57 = vmul.f32 1.442695, %v2181_v44  ;;  %v2084_v39 = vand.u32 2147483647, %v2068_v47  ;;  %v2175_v29 = vand.u32 2147483647, %v3862_v32 }
0x1424   :  { %2890 = vpow2.f32 %v2190_v4  ;;  %v2106_v19 = vmul.f32 1.442695, %v2093_v41  ;;  %v2180_v1 = vsub.f32 0.0, %v2172_v2  ;;  %v2087_v7 = vand.u32 2147483647, %v2071_v3 }
0x1425   :  { %2892 = vpow2.f32 %v2100_v42  ;;  %v2092_v17 = vsub.f32 0.0, %v2084_v39  ;;  %v2070_v24 = vsub.f32 0.0, %v3873_v9  ;;  %v2183_v58 = vsub.f32 0.0, %v2175_v29 }
0x1426   :  { %2894 = vpow2.f32 %v2188_v45  ;;  %v2192_v23 = vmul.f32 1.442695, %v2180_v1  ;;  %v2095_v51 = vsub.f32 0.0, %v2087_v7  ;;  %v2174_v49 = vand.u32 2147483647, %v3873_v9 }
0x1427   :  { %2896 = vpow2.f32 %v2194_v57  ;;  %v2104_v16 = vmul.f32 1.442695, %v2092_v17  ;;  %v2086_v53 = vand.u32 2147483647, %v2070_v24  ;;  %v2198_v55 = vmul.f32 1.442695, %v2183_v58 }
0x1428   :  { %2898 = vpow2.f32 %v2106_v19  ;;  %v2110_v62 = vmul.f32 1.442695, %v2095_v51  ;;  %v2182_v44 = vsub.f32 0.0, %v2174_v49  ;;  %v2073_v51 = vmax.f32 %v2065_v43, 0.0 }
0x1429   :  { %2900 = vpow2.f32 %v2192_v23  ;;  %v2094_v5 = vsub.f32 0.0, %v2086_v53  ;;  %v2074_v53 = vmax.f32 %v2066_v21, 0.0 }
0x142a   :  { %2902 = vpow2.f32 %v2104_v16  ;;  %v2196_v7 = vmul.f32 1.442695, %v2182_v44 }
0x142b   :  { %v2881_v50 = vpop.eup %2880  ;;  %v2108_v57 = vmul.f32 1.442695, %v2094_v5 }
0x142c   :  { %v2201_v35 = vadd.f32 1.0, %v2881_v50 }
0x142d   :  { %v2883_v52 = vpop.eup %2882 }
0x142e   :  { %v2885_v36 = vpop.eup %2884  ;;  %v2113_v37 = vadd.f32 1.0, %v2883_v52  ;;  %2904 = vlog2.f32 %v2201_v35  ;;  %v2160_v52 = vmax.f32 %v3840_v48, 0.0 }
0x142f   :  { %v2887_v38 = vpop.eup %2886  ;;  %v2115_v20 = vadd.f32 1.0, %v2885_v36 }
0x1430   :  { %v2889_v12 = vpop.eup %2888  ;;  %2906 = vlog2.f32 %v2113_v37  ;;  %v2200_v26 = vadd.f32 1.0, %v2887_v38  ;;  %v2072_v37 = vmax.f32 %v2064_v11, 0.0 }
0x1431   :  { %v2891_v14 = vpop.eup %2890  ;;  %v2112_v30 = vadd.f32 1.0, %v2889_v12  ;;  %2908 = vpow2.f32 %v2110_v62 }
0x1432   :  { %v2893_v28 = vpop.eup %2892  ;;  %2910 = vlog2.f32 %v2200_v26  ;;  %v2203_v4 = vadd.f32 1.0, %v2891_v14 }
0x1433   :  { %v2895_v15 = vpop.eup %2894  ;;  %2912 = vlog2.f32 %v2112_v30  ;;  %v2114_v59 = vadd.f32 1.0, %v2893_v28 }
0x1434   :  { %2914 = vlog2.f32 %v2115_v20  ;;  %v2202_v13 = vadd.f32 1.0, %v2895_v15  ;;  %v2897_v27 = vpop.eup %2896  ;;  %v2161_v20 = vmax.f32 %v3832_v6, 0.0  ;;  %v2162_v6 = vmax.f32 %v3842_v0, 0.0 }
0x1435   :  { %2916 = vlog2.f32 %v2114_v59  ;;  %v2899_v10 = vpop.eup %2898  ;;  %v2205_v19 = vadd.f32 1.0, %v2897_v27 }
0x1436   :  { %2918 = vlog2.f32 %v2202_v13  ;;  %v2901_v42 = vpop.eup %2900  ;;  %v2117_v41 = vadd.f32 1.0, %v2899_v10  ;;  %v2075_v10 = vmax.f32 %v2067_v63, 0.0 }
0x1437   :  { %2920 = vlog2.f32 %v2203_v4  ;;  %v2903_v60 = vpop.eup %2902  ;;  %v2204_v45 = vadd.f32 1.0, %v2901_v42 }
0x1438   :  { %v2116_v2 = vadd.f32 1.0, %v2903_v60  ;;  %2922 = vpow2.f32 %v2198_v55  ;;  %v2257_v60 = vsub.f32 1.0, %v3427_v22 }
0x143a   :  { %2924 = vlog2.f32 %v2116_v2  ;;  %v2163_v2 = vmax.f32 %v3834_v56, 0.0 }
0x143b   :  { %v2905_v39 = vpop.eup %2904  ;;  %2926 = vlog2.f32 %v2204_v45 }
0x143c   :  { %2928 = vlog2.f32 %v2117_v41  ;;  %v2211_v35 = vmul.f32 0.6931472, %v2905_v39 }
0x143d   :  { %v2907_v1 = vpop.eup %2906  ;;  %2930 = vpow2.f32 %v2108_v57  ;;  %v2256_v57 = vsub.f32 1.0, %v3431_v54 }
0x143e   :  { %v2909_v17 = vpop.eup %2908  ;;  %v2123_v16 = vmul.f32 0.6931472, %v2907_v1  ;;  %2932 = vlog2.f32 %v2205_v19  ;;  %v2225_v58 = vadd.f32 %v2211_v35, %v2161_v20 }
0x143f   :  { %v2911_v23 = vpop.eup %2910  ;;  %v2119_v38 = vadd.f32 1.0, %v2909_v17  ;;  %2934 = vpow2.f32 %v2196_v7 }
0x1440   :  { %v2913_v50 = vpop.eup %2912  ;;  %v2209_v62 = vmul.f32 0.6931472, %v2911_v23  ;;  %v2137_v43 = vadd.f32 %v2123_v16, %v2073_v51  ;;  %v2233_v55 = vsub.f32 0.0, %v2225_v58  ;;  %v2258_v16 = vsub.f32 1.0, %v3423_v61 }
0x1441   :  { %v2915_v36 = vpop.eup %2914  ;;  %v2121_v29 = vmul.f32 0.6931472, %v2913_v50  ;;  %2936 = vlog2.f32 %v2119_v38  ;;  %v2077_v50 = vmax.f32 %v2069_v8, 0.0 }
0x1442   :  { %v2917_v12 = vpop.eup %2916  ;;  %v2224_v30 = vadd.f32 %v2209_v62, %v2160_v52  ;;  %v2127_v48 = vmul.f32 0.6931472, %v2915_v36  ;;  %v2145_v13 = vsub.f32 0.0, %v2137_v43  ;;  %v2241_v63 = vmax.f32 %v2233_v55, -100.0 }
0x1443   :  { %v2919_v26 = vpop.eup %2918  ;;  %v2136_v14 = vadd.f32 %v2121_v29, %v2072_v37  ;;  %v2125_v28 = vmul.f32 0.6931472, %v2917_v12  ;;  %v2076_v62 = vmax.f32 %v2068_v47, 0.0  ;;  %v2164_v12 = vmax.f32 %v3855_v46, 0.0 }
0x1444   :  { %v2921_v15 = vpop.eup %2920  ;;  %v2213_v4 = vmul.f32 0.6931472, %v2919_v26  ;;  %v2232_v49 = vsub.f32 0.0, %v2224_v30  ;;  %v2139_v41 = vadd.f32 %v2127_v48, %v2075_v10  ;;  %v2153_v1 = vmax.f32 %v2145_v13, -100.0 }
0x1445   :  { %v2144_v59 = vsub.f32 0.0, %v2136_v14  ;;  %v2923_v11 = vpop.eup %2922  ;;  %v2138_v27 = vadd.f32 %v2125_v28, %v2074_v53  ;;  %v2215_v5 = vmul.f32 0.6931472, %v2921_v15  ;;  %v2265_v8 = vmul.f32 %v2257_v60, %v2241_v63 }
0x1446   :  { %v2226_v44 = vadd.f32 %v2213_v4, %v2162_v6  ;;  %v2207_v39 = vadd.f32 1.0, %v2923_v11  ;;  %v2240_v0 = vmax.f32 %v2232_v49, -100.0  ;;  %v2147_v29 = vsub.f32 0.0, %v2139_v41 }
0x1447   :  { %v2925_v42 = vpop.eup %2924  ;;  %v2152_v45 = vmax.f32 %v2144_v59, -100.0  ;;  %v2146_v7 = vsub.f32 0.0, %v2138_v27  ;;  %v2227_v51 = vadd.f32 %v2215_v5, %v2163_v2  ;;  %v2249_v20 = vmul.f32 %v3427_v22, %v2153_v1 }
0x1448   :  { %v2927_v21 = vpop.eup %2926  ;;  %v2129_v17 = vmul.f32 0.6931472, %v2925_v42  ;;  %v2234_v56 = vsub.f32 0.0, %v2226_v44  ;;  %2938 = vlog2.f32 %v2207_v39  ;;  %v2264_v26 = vmul.f32 %v2256_v57, %v2240_v0 }
0x1449   :  { %v2929_v19 = vpop.eup %2928  ;;  %v2248_v52 = vmul.f32 %v3431_v54, %v2152_v45  ;;  %v2217_v36 = vmul.f32 0.6931472, %v2927_v21  ;;  %v2154_v43 = vmax.f32 %v2146_v7, -100.0  ;;  %v2235_v30 = vsub.f32 0.0, %v2227_v51 }
0x144a   :  { %v2931_v23 = vpop.eup %2930  ;;  %v2131_v38 = vmul.f32 0.6931472, %v2929_v19  ;;  %v2140_v14 = vadd.f32 %v2129_v17, %v2076_v62  ;;  %v2242_v15 = vmax.f32 %v2234_v56, -100.0  ;;  %v2155_v4 = vmax.f32 %v2147_v29, -100.0 }
0x144b   :  { %v2933_v35 = vpop.eup %2932  ;;  %v2118_v54 = vadd.f32 1.0, %v2931_v23  ;;  %v2272_v58 = vadd.f32 %v2264_v26, %v2248_v52  ;;  %v2228_v59 = vadd.f32 %v2217_v36, %v2164_v12  ;;  %v2165_v11 = vmax.f32 %v3849_v40, 0.0 }
0x144c   :  { %v2935_v37 = vpop.eup %2934  ;;  %v2219_v28 = vmul.f32 0.6931472, %v2933_v35  ;;  %v2141_v48 = vadd.f32 %v2131_v38, %v2077_v50  ;;  %v2273_v46 = vadd.f32 %v2265_v8, %v2249_v20  ;;  %v2250_v22 = vmul.f32 %v3423_v61, %v2154_v43 }
0x144d   :  { %v2206_v47 = vadd.f32 1.0, %v2935_v37  ;;  %2940 = vlog2.f32 %v2118_v54  ;;  %v2148_v13 = vsub.f32 0.0, %v2140_v14  ;;  %v2243_v49 = vmax.f32 %v2235_v30, -100.0 }
0x144e   :  { %v2937_v53 = vpop.eup %2936  ;;  %v2229_v27 = vadd.f32 %v2219_v28, %v2165_v11  ;;  %v2280_v6 = vsub.f32 0.0, %v2272_v58  ;;  %v2266_v55 = vmul.f32 %v2258_v16, %v2242_v15  ;;  %v2236_v10 = vsub.f32 0.0, %v2228_v59 }
0x144f   :  { %2942 = vlog2.f32 %v2206_v47  ;;  %v2135_v5 = vmul.f32 0.6931472, %v2937_v53  ;;  %v2259_v42 = vsub.f32 1.0, %v3419_v25  ;;  %v2149_v60 = vsub.f32 0.0, %v2141_v48 }
0x1450   :  { %v2079_v45 = vmax.f32 %v2071_v3, 0.0  ;;  %v2281_v44 = vsub.f32 0.0, %v2273_v46  ;;  %v2251_v40 = vmul.f32 %v3419_v25, %v2155_v4  ;;  %v2274_v21 = vadd.f32 %v2266_v55, %v2250_v22 }
0x1451   :  { %v2156_v41 = vmax.f32 %v2148_v13, -100.0  ;;  %v2237_v61 = vsub.f32 0.0, %v2229_v27  ;;  %v2267_v2 = vmul.f32 %v2259_v42, %v2243_v49  ;;  %v2288_v57 = vsel %vm1151_vm12, %v2280_v6, 0.0 }
0x1452   :  { %v2244_v39 = vmax.f32 %v2236_v10, -100.0  ;;  %v2143_v19 = vadd.f32 %v2135_v5, %v2079_v45  ;;  %v2157_v1 = vmax.f32 %v2149_v60, -100.0  ;;  %v2260_v0 = vsub.f32 1.0, %v3415_v18 }
0x1453   :  { %v2289_v17 = vsel %vm1151_vm12, %v2281_v44, 0.0  ;;  %v2275_v23 = vadd.f32 %v2267_v2, %v2251_v40  ;;  %v2282_v63 = vsub.f32 0.0, %v2274_v21  ;;  %v2252_v3 = vmul.f32 %v3415_v18, %v2156_v41 }
0x1454   :  { %v2290_v51 = vadd.f32 %v2289_v17, %v2288_v57  ;;  %v2245_v25 = vmax.f32 %v2237_v61, -100.0  ;;  %v2167_v16 = vmax.f32 %v3862_v32, 0.0  ;;  %v2268_v35 = vmul.f32 %v2260_v0, %v2244_v39 }
0x1455   :  { %v2939_v7 = vpop.eup %2938  ;;  %v2151_v52 = vsub.f32 0.0, %v2143_v19  ;;  %v2253_v56 = vmul.f32 %v3408_v33, %v2157_v1  ;;  %v2261_v62 = vsub.f32 1.0, %v3408_v33  ;;  %v2283_v29 = vsub.f32 0.0, %v2275_v23 }
0x1456   :  { %v2223_v50 = vmul.f32 0.6931472, %v2939_v7  ;;  %v2276_v38 = vadd.f32 %v2268_v35, %v2252_v3  ;;  %v2078_v12 = vmax.f32 %v2070_v24, 0.0  ;;  %v2291_v18 = vsel %vm1151_vm12, %v2282_v63, 0.0 }
0x1457   :  { %v2269_v26 = vmul.f32 %v2261_v62, %v2245_v25  ;;  %v2292_v14 = vadd.f32 %v2291_v18, %v2290_v51  ;;  %v2159_v8 = vmax.f32 %v2151_v52, -100.0  ;;  %v2166_v30 = vmax.f32 %v3873_v9, 0.0 }
0x1458   :  { %v2231_v36 = vadd.f32 %v2223_v50, %v2167_v16  ;;  %v2284_v59 = vsub.f32 0.0, %v2276_v38  ;;  %v2293_v47 = vsel %vm1151_vm12, %v2283_v29, 0.0  ;;  %v2263_v11 = vsub.f32 1.0, %v3406_v31 }
0x1459   :  { %v2277_v33 = vadd.f32 %v2269_v26, %v2253_v56  ;;  %v2294_v24 = vadd.f32 %v2293_v47, %v2292_v14  ;;  %v2255_v48 = vmul.f32 %v3406_v31, %v2159_v8  ;;  %v2262_v22 = vsub.f32 1.0, %v3411_v34 }
0x145a   :  { %v2941_v37 = vpop.eup %2940  ;;  %v2239_v43 = vsub.f32 0.0, %v2231_v36  ;;  %v2295_v27 = vsel %vm1151_vm12, %v2284_v59, 0.0 }
0x145b   :  { %v2133_v32 = vmul.f32 0.6931472, %v2941_v37  ;;  %v2285_v49 = vsub.f32 0.0, %v2277_v33  ;;  %v2296_v55 = vadd.f32 %v2295_v27, %v2294_v24 }
0x145c   :  { %v2943_v20 = vpop.eup %2942  ;;  %v2247_v58 = vmax.f32 %v2239_v43, -100.0 }
0x145d   :  { %v2221_v28 = vmul.f32 0.6931472, %v2943_v20  ;;  %v2142_v54 = vadd.f32 %v2133_v32, %v2078_v12  ;;  %v2297_v60 = vsel %vm1151_vm12, %v2285_v49, 0.0 }
0x145e   :  { %v2271_v9 = vmul.f32 %v2263_v11, %v2247_v58  ;;  %v2298_v45 = vadd.f32 %v2297_v60, %v2296_v55 }
0x145f   :  { %v2230_v15 = vadd.f32 %v2221_v28, %v2166_v30  ;;  %v2150_v53 = vsub.f32 0.0, %v2142_v54 }
0x1460   :  { %v2279_v5 = vadd.f32 %v2271_v9, %v2255_v48 }
0x1461   :  { %v2238_v4 = vsub.f32 0.0, %v2230_v15  ;;  %v2158_v46 = vmax.f32 %v2150_v53, -100.0 }
0x1462   :  { %v2287_v40 = vsub.f32 0.0, %v2279_v5 }
0x1463   :  { %v2246_v13 = vmax.f32 %v2238_v4, -100.0  ;;  %v2254_v6 = vmul.f32 %v3411_v34, %v2158_v46 }
0x1464   :  { %v2301_v41 = vsel %vm1151_vm12, %v2287_v40, 0.0 }
0x1465   :  { %v2270_v10 = vmul.f32 %v2262_v22, %v2246_v13 }
0x1467   :  { %v2278_v42 = vadd.f32 %v2270_v10, %v2254_v6 }
0x1469   :  { %v2286_v44 = vsub.f32 0.0, %v2278_v42 }
0x146b   :  { %v2299_v31 = vsel %vm1151_vm12, %v2286_v44, 0.0 }
0x146c   :  { %v2300_v21 = vadd.f32 %v2299_v31, %v2298_v45 }
0x146e   :  { %v2302_v61 = vadd.f32 %v2301_v41, %v2300_v21 }
0x1470   :  { %2303 = vadd.xlane.f32.xlu0 %v2302_v61 }
0x14f9   :  { %v2304_v2 = vpop.xlane.xlu0 %2303 }
0x14fa   :  { %v2305_v57 = vrot.slane %v2304_v2, 4 }
0x14fc   :  { %v2306_v39 = vadd.f32 %v2305_v57, %v2304_v2 }
0x14fe   :  { %v2307_v34 = vrot.slane %v2306_v39, 2 }
0x1500   :  { %v2308_v19 = vadd.f32 %v2307_v34, %v2306_v39 }
0x1502   :  { %v2309_v1 = vrot.slane %v2308_v19, 1 }
0x1504   :  { %v2310_v0 = vadd.f32 %v2309_v1, %v2308_v19 }
0x1506   :  { %2627 = vpush %v2310_v0 }
0x1537   :  { %s2628_s12 = spop %2627 }
0x1538   :  { %s2312_s13 = sadd.f32 %s2628_s12, %s2626_s0 }
0x153a   :  { %s2315_s1 = smul.f32 0.0078125, %s2312_s13 }
0x153c   :  { %v2316_v7 = vstv %s2315_s1 }
0x153d   :  { %2318 = vst.msk [vmem:[#allocation2] sm:$0x1] %vm2317_vm13, %v2316_v7 }
0x153e   :  { %2968 = shalt.err (!%p2965_p4)
}
0x153f   :  { %2328 = dma.vmem_to_hbm [thread:$0]  %s2326_s17, 16, %s3933_s2, [#allocation3]  }
0x1540   :  { %2977 = dma.done.wait [#allocation3], 16  }
0x1541   :  { %2978 = vsyncadd [#allocation3], 4294967280 }
0x1542   :  { %2332 = vsyncpa [#allocation3], 1 }

</bundles_post_ra>
